<compile_context>
chip_gen: v5e
topology: v5e:2x2
jax: 0.10.0
libtpu: 0.0.40
codegen_flags: <defaults>
</compile_context>

<pallas_src>
import functools

import jax
import jax.numpy as jnp
from jax import lax
from jax.experimental import pallas as pl
from jax.experimental.pallas import tpu as pltpu

NEG_INF = -1e30  # stand-in for float('-inf'); underflows to 0 in softmax identically
BF16 = jnp.bfloat16


# ----------------------------- in-kernel math helpers -----------------------------

def _softmax_last(x):
    m = jnp.max(x, axis=-1, keepdims=True)
    e = jnp.exp(x - m)
    return e * pl.reciprocal(jnp.sum(e, axis=-1, keepdims=True), approx=True)


def _layer_norm(x, w, b, eps=1e-5):
    mu = jnp.mean(x, axis=-1, keepdims=True)
    xc = x - mu
    var = jnp.mean(xc * xc, axis=-1, keepdims=True)
    return xc * lax.rsqrt(var + eps) * w + b


def _mha_from_rows(q_rows, k_rows, v_rows, bias, wo_t, bo, bb, H):
    """Attention given already-projected rows.

    q_rows: (bb*Tq, E) f32 (scale already folded into the Q projection)
    k_rows/v_rows: (bb*Tk, E) f32
    bias: broadcastable to (bb, Tq, Tk) additive logit bias
    wo_t: (E, E) bf16 output-projection weight (pre-transposed), bo: (1, E) f32
    """
    Rq, E = q_rows.shape
    Rk = k_rows.shape[0]
    Tq, Tk = Rq // bb, Rk // bb
    dh = E // H

    q3 = q_rows.reshape(bb, Tq, E).astype(BF16)
    k3 = k_rows.reshape(bb, Tk, E).astype(BF16)
    v3 = v_rows.reshape(bb, Tk, E).astype(BF16)

    ctx_heads = []
    for h in range(H):                      # per-head logits/ctx dots only
        sl = slice(h * dh, (h + 1) * dh)
        qh, kh, vh = q3[:, :, sl], k3[:, :, sl], v3[:, :, sl]
        logits = lax.dot_general(qh, kh, (((2,), (2,)), ((0,), (0,))),
                                 preferred_element_type=jnp.float32) + bias
        p = _softmax_last(logits)
        ctx_heads.append(lax.dot_general(p.astype(BF16), vh,
                                         (((2,), (1,)), ((0,), (0,))),
                                         preferred_element_type=jnp.float32))
    ctx = jnp.concatenate(ctx_heads, axis=-1).reshape(Rq, E)   # heads back on the lane dim
    return jnp.dot(ctx.astype(BF16), wo_t, preferred_element_type=jnp.float32) + bo


# ----------------------------- kernel A: fused decoder layer -----------------------------

def decoder_layer_kernel(
        x_ref, enc_ref, dkpm_ref, epad_ref,
        wqkv1_ref, bqkv1_ref, wo1_ref, bo1_ref, g1_ref, be1_ref,
        wq2_ref, bq2_ref, wkv2_ref, bkv2_ref, wo2_ref, bo2_ref, g2_ref, be2_ref,
        wf1_ref, bf1_ref, wf2_ref, bf2_ref, g3_ref, be3_ref,
        hid_ref, *, bb, T, S, H):
    E = x_ref.shape[-1]

    x = x_ref[...]          # (bb*T, E) f32
    enc = enc_ref[...]      # (bb*S, E) f32

    # --- attention biases built in-kernel from thin mask rows ---
    rows = lax.broadcasted_iota(jnp.int32, (T, T), 0)
    cols = lax.broadcasted_iota(jnp.int32, (T, T), 1)
    causal = jnp.where(cols <= rows, 0.0, NEG_INF).astype(jnp.float32)          # (T, T)
    # PyTorch float key_padding_mask ((~mask).float()) is ADDED (+1.0 on padded keys).
    self_bias = causal[None, :, :] + dkpm_ref[...]                              # (bb, T, T)
    cross_bias = jnp.where(epad_ref[...] > 0.0, NEG_INF, 0.0).astype(jnp.float32)  # (bb,1,S)

    # --- masked causal self-attention (fused QKV) + residual + LN ---
    qkv = jnp.dot(x.astype(BF16), wqkv1_ref[...],
                  preferred_element_type=jnp.float32) + bqkv1_ref[...]          # (bb*T, 3E)
    attn1 = _mha_from_rows(qkv[:, :E], qkv[:, E:2 * E], qkv[:, 2 * E:],
                           self_bias, wo1_ref[...], bo1_ref[...], bb, H)
    out1 = _layer_norm(x + attn1, g1_ref[...], be1_ref[...])

    # --- cross attention on encoder output (fused KV) + residual + LN ---
    kv2 = jnp.dot(enc.astype(BF16), wkv2_ref[...],
                  preferred_element_type=jnp.float32) + bkv2_ref[...]           # (bb*S, 2E)
    q2 = jnp.dot(out1.astype(BF16), wq2_ref[...],
                 preferred_element_type=jnp.float32) + bq2_ref[...]             # (bb*T, E)
    attn2 = _mha_from_rows(q2, kv2[:, :E], kv2[:, E:],
                           cross_bias, wo2_ref[...], bo2_ref[...], bb, H)
    out2 = _layer_norm(out1 + attn2, g2_ref[...], be2_ref[...])

    # --- FFN (Linear+ReLU, Linear+ReLU) + residual + LN ---
    # TODO(synk): dropout_1 / dropout_2 / attention dropouts are identity (eval mode).
    h1 = jnp.maximum(jnp.dot(out2.astype(BF16), wf1_ref[...],
                             preferred_element_type=jnp.float32) + bf1_ref[...], 0.0)
    h2 = jnp.maximum(jnp.dot(h1.astype(BF16), wf2_ref[...],
                             preferred_element_type=jnp.float32) + bf2_ref[...], 0.0)
    hid_ref[...] = _layer_norm(h2 + out2, g3_ref[...], be3_ref[...]).astype(hid_ref.dtype)


# ----------------------------- kernel B: vocab projection (tiled rows x vocab) -----------------------------

def vocab_proj_kernel(hid_ref, w_ref, b_ref, out_ref):
    out_ref[...] = (jnp.dot(hid_ref[...], w_ref[...], preferred_element_type=jnp.float32)
                    + b_ref[...])


# ----------------------------- host-side weight prep -----------------------------

def _prep_fused_qkv(w_qkv, b_qkv, scale):
    """(3E,E)/(1,3E) PyTorch in_proj -> (E,3E) bf16 RHS + (1,3E) f32 bias, scale folded into Q."""
    E = w_qkv.shape[1]
    w_t = jnp.concatenate([w_qkv[:E].T * scale, w_qkv[E:2 * E].T, w_qkv[2 * E:].T],
                          axis=1).astype(BF16)
    b = jnp.concatenate([b_qkv[:, :E] * scale, b_qkv[:, E:]], axis=1).astype(jnp.float32)
    return w_t, b


def _prep_cross(w_qkv, b_qkv, scale):
    """Cross-attention: Q weight separately (from decoder), fused K/V weight (from encoder)."""
    E = w_qkv.shape[1]
    wq_t = (w_qkv[:E].T * scale).astype(BF16)                                    # (E, E)
    bq = (b_qkv[:, :E] * scale).astype(jnp.float32)                              # (1, E)
    wkv_t = jnp.concatenate([w_qkv[E:2 * E].T, w_qkv[2 * E:].T], axis=1).astype(BF16)  # (E, 2E)
    bkv = b_qkv[:, E:].astype(jnp.float32)                                       # (1, 2E)
    return wq_t, bq, wkv_t, bkv


def _pick_batch_block(B, T, S, target_rows=256):
    """Batch block so matmul M ~ target_rows, while keeping >=2 grid steps when B allows."""
    bb = max(1, min(B, target_rows // max(max(T, S), 1)))
    while B % bb:
        bb -= 1
    if B // bb < 2 and B > 1:
        bb = max(1, bb // 2)
        while B % bb:
            bb -= 1
    if ((bb * T) % 8 or (bb * S) % 8) and bb != B:   # (8,128) sublane constraint fallback
        bb = B
    return bb


def _vmem_limit(in_block_bytes, out_block_bytes):
    """Scoped VMEM limit from actual block footprints (x2 double-buffering) + headroom."""
    need = 2 * (in_block_bytes + out_block_bytes) + (8 << 20)
    return int(min(max(need, 32 << 20), 48 << 20))   # safe on v5e/v6e/v7x


# ----------------------------- wrapper -----------------------------

def transformer_decoder(embeddings, encoder_output, params,
                        decoder_mask=None, encoder_mask=None, num_heads=4):
    B, T, E = embeddings.shape
    S = encoder_output.shape[1]
    V = params["w_out"].shape[0]
    H = num_heads
    assert E % H == 0 and E % 128 == 0
    dh = E // H
    scale = 1.0 / (dh ** 0.5)

    # thin mask rows (no (B,T,T)/(B,T,S) bias materialization in HBM)
    if decoder_mask is not None:
        dkpm = (~decoder_mask).astype(jnp.float32).reshape(B, 1, T)
    else:
        dkpm = jnp.zeros((B, 1, T), jnp.float32)
    if encoder_mask is not None:
        epad = (~encoder_mask).astype(jnp.float32).reshape(B, 1, S)
    else:
        epad = jnp.zeros((B, 1, S), jnp.float32)

    # one-time host-side weight re-layout: pre-transposed, fused, scale-folded, bf16
    wqkv1_t, bqkv1 = _prep_fused_qkv(params["w_qkv1"], params["b_qkv1"], scale)
    wo1_t = params["w_o1"].T.astype(BF16)
    wq2_t, bq2, wkv2_t, bkv2 = _prep_cross(params["w_qkv2"], params["b_qkv2"], scale)
    wo2_t = params["w_o2"].T.astype(BF16)
    wf1_t = params["w_ffn1"].T.astype(BF16)          # (E, 4E)
    wf2_t = params["w_ffn2"].T.astype(BF16)          # (4E, E)
    wout_t = params["w_out"].T.astype(BF16)          # (E, V)

    weight_args = [
        wqkv1_t, bqkv1, wo1_t, params["b_o1"], params["ln1_w"], params["ln1_b"],
        wq2_t, bq2, wkv2_t, bkv2, wo2_t, params["b_o2"], params["ln2_w"], params["ln2_b"],
        wf1_t, params["b_ffn1"], wf2_t, params["b_ffn2"], params["ln3_w"], params["ln3_b"],
    ]

    # --- kernel A: fused decoder layer, batch folded into the MXU row dim ---
    bb = _pick_batch_block(B, T, S)
    x2d = embeddings.reshape(B * T, E)
    enc2d = encoder_output.reshape(B * S, E)

    data_specs = [
        pl.BlockSpec((bb * T, E), lambda i: (i, 0)),
        pl.BlockSpec((bb * S, E), lambda i: (i, 0)),
        pl.BlockSpec((bb, 1, T), lambda i: (i, 0, 0)),
        pl.BlockSpec((bb, 1, S), lambda i: (i, 0, 0)),
    ]
    weight_specs = [pl.BlockSpec(w.shape, lambda i: (0, 0)) for w in weight_args]

    in_block_bytes_a = (bb * T * E * 4 + bb * S * E * 4 + bb * T * 4 + bb * S * 4
                        + sum(int(w.size) * w.dtype.itemsize for w in weight_args))
    out_block_bytes_a = bb * T * E * 2

    kernel_a = functools.partial(decoder_layer_kernel, bb=bb, T=T, S=S, H=H)
    hidden = pl.pallas_call(
        kernel_a,
        out_shape=jax.ShapeDtypeStruct((B * T, E), BF16),   # bf16 handoff to kernel B
        grid_spec=pltpu.PrefetchScalarGridSpec(
            num_scalar_prefetch=0,
            grid=(B // bb,),
            in_specs=data_specs + weight_specs,
            out_specs=pl.BlockSpec((bb * T, E), lambda i: (i, 0)),
        ),
        compiler_params=pltpu.CompilerParams(
            dimension_semantics=("parallel",),
            vmem_limit_bytes=_vmem_limit(in_block_bytes_a, out_block_bytes_a)),
    )(x2d, enc2d, dkpm, epad, *weight_args)

    # --- kernel B: vocab projection, vocab-outer / rows-inner so W streams once ---
    BT = B * T
    tr = next((c for c in (512, 256, 128) if BT % c == 0), BT)
    tv = next((c for c in (512, 256, 128) if V % c == 0), V)

    in_block_bytes_b = tr * E * 2 + E * tv * 2 + tv * 4
    out_block_bytes_b = tr * tv * 4

    logits = pl.pallas_call(
        vocab_proj_kernel,
        out_shape=jax.ShapeDtypeStruct((BT, V), jnp.float32),
        grid_spec=pltpu.PrefetchScalarGridSpec(
            num_scalar_prefetch=0,
            grid=(V // tv, BT // tr),
            in_specs=[
                pl.BlockSpec((tr, E), lambda j, r: (r, 0)),
                pl.BlockSpec((E, tv), lambda j, r: (0, j)),
                pl.BlockSpec((1, tv), lambda j, r: (0, j)),
            ],
            out_specs=pl.BlockSpec((tr, tv), lambda j, r: (r, j)),
        ),
        compiler_params=pltpu.CompilerParams(
            dimension_semantics=("parallel", "parallel"),
            vmem_limit_bytes=_vmem_limit(in_block_bytes_b, out_block_bytes_b)),
    )(hidden, wout_t, params["b_out"])

    return logits.reshape(B, T, V)


# ----------------------------- pure-JAX f32 reference (verification only) -----------------------------

def _attention_biases(B, T, S, decoder_mask, encoder_mask):
    causal = jnp.tril(jnp.ones((T, T), jnp.float32))
    causal_bias = jnp.where(causal == 0.0, NEG_INF, 0.0).astype(jnp.float32)
    self_bias = jnp.broadcast_to(causal_bias, (B, T, T))
    if decoder_mask is not None:
        kpm = (~decoder_mask).astype(jnp.float32)
        self_bias = self_bias + kpm[:, None, :]
    cross_bias = jnp.zeros((B, T, S), jnp.float32)
    if encoder_mask is not None:
        cross_bias = cross_bias + jnp.where(encoder_mask[:, None, :], 0.0, NEG_INF)
    return self_bias, cross_bias


def _reference(embeddings, encoder_output, params, decoder_mask, encoder_mask, num_heads):
    B, T, E = embeddings.shape
    S = encoder_output.shape[1]
    self_bias, cross_bias = _attention_biases(B, T, S, decoder_mask, encoder_mask)

    def mha(q_in, kv_in, w_qkv, b_qkv, w_o, b_o, bias):
        dh = E // num_heads
        q = q_in @ w_qkv[0:E].T + b_qkv[0, 0:E]
        k = kv_in @ w_qkv[E:2 * E].T + b_qkv[0, E:2 * E]
        v = kv_in @ w_qkv[2 * E:3 * E].T + b_qkv[0, 2 * E:3 * E]
        q = q.reshape(B, -1, num_heads, dh).transpose(0, 2, 1, 3) / (dh ** 0.5)
        k = k.reshape(B, -1, num_heads, dh).transpose(0, 2, 1, 3)
        v = v.reshape(B, -1, num_heads, dh).transpose(0, 2, 1, 3)
        logits = jnp.einsum("bhqd,bhkd->bhqk", q, k) + bias[:, None]
        p = jax.nn.softmax(logits, axis=-1)
        ctx = jnp.einsum("bhqk,bhkd->bhqd", p, v).transpose(0, 2, 1, 3).reshape(B, -1, E)
        return ctx @ w_o.T + b_o[0]

    def ln(x, w, b):
        mu = x.mean(-1, keepdims=True)
        var = ((x - mu) ** 2).mean(-1, keepdims=True)
        return (x - mu) * lax.rsqrt(var + 1e-5) * w[0] + b[0]

    p = params
    a1 = mha(embeddings, embeddings, p["w_qkv1"], p["b_qkv1"], p["w_o1"], p["b_o1"], self_bias)
    o1 = ln(embeddings + a1, p["ln1_w"], p["ln1_b"])
    a2 = mha(o1, encoder_output, p["w_qkv2"], p["b_qkv2"], p["w_o2"], p["b_o2"], cross_bias)
    o2 = ln(o1 + a2, p["ln2_w"], p["ln2_b"])
    h = jnp.maximum(o2 @ p["w_ffn1"].T + p["b_ffn1"][0], 0.0)
    h = jnp.maximum(h @ p["w_ffn2"].T + p["b_ffn2"][0], 0.0)
    f = ln(h + o2, p["ln3_w"], p["ln3_b"])
    return f @ p["w_out"].T + p["b_out"][0]


# ----------------------------- parameter init (PyTorch conventions) -----------------------------

def init_params(key, embed_dim, vocab_size):
    E, V = embed_dim, vocab_size
    ks = iter(jax.random.split(key, 32))

    def w(shape, scale=0.02):
        return (scale * jax.random.normal(next(ks), shape)).astype(jnp.float32)

    return {
        "w_qkv1": w((3 * E, E)), "b_qkv1": w((1, 3 * E)),
        "w_o1": w((E, E)), "b_o1": w((1, E)),
        "ln1_w": 1.0 + w((1, E), 0.1), "ln1_b": w((1, E), 0.1),
        "w_qkv2": w((3 * E, E)), "b_qkv2": w((1, 3 * E)),
        "w_o2": w((E, E)), "b_o2": w((1, E)),
        "ln2_w": 1.0 + w((1, E), 0.1), "ln2_b": w((1, E), 0.1),
        "w_ffn1": w((4 * E, E)), "b_ffn1": w((1, 4 * E)),
        "w_ffn2": w((E, 4 * E)), "b_ffn2": w((1, E)),
        "ln3_w": 1.0 + w((1, E), 0.1), "ln3_b": w((1, E), 0.1),
        "w_out": w((V, E)), "b_out": w((1, V)),
    }


# ----------------------------- main -----------------------------

if __name__ == "__main__":
    # lane-dense small config: E multiple of 128, V multiple of 128 (exercises V tiling)
    B, T, S, E, H, V = 2, 8, 8, 128, 4, 256

    key = jax.random.PRNGKey(0)
    k_emb, k_enc, k_par = jax.random.split(key, 3)

    embeddings = jax.random.normal(k_emb, (B, T, E), jnp.float32)
    encoder_output = jax.random.normal(k_enc, (B, S, E), jnp.float32)
    params = init_params(k_par, E, V)

    # masks: 1/True = valid, 0/False = padding
    decoder_mask = jnp.array([[True] * T, [True] * (T - 2) + [False] * 2])
    encoder_mask = jnp.array([[True] * S, [True] * (S - 3) + [False] * 3])

    preds = transformer_decoder(embeddings, encoder_output, params,
                                decoder_mask=decoder_mask, encoder_mask=encoder_mask,
                                num_heads=H)
    preds = jax.block_until_ready(preds)

    ref = _reference(embeddings, encoder_output, params, decoder_mask, encoder_mask, H)
    assert preds.shape == (B, T, V)
    # tolerance covers bf16 MXU operands (f32 accumulation), bf16 hidden handoff and the
    # EUP approx-reciprocal in the in-kernel softmax
    err = float(jnp.max(jnp.abs(preds - ref)))
    assert jnp.allclose(preds, ref, rtol=3e-2, atol=3e-2), err

    print("KERNEL_OK")
</pallas_src>

<mosaic_0001>
module attributes {stable_mosaic.version = 11 : i64} {
  func.func @decoder_layer_kernel(%arg0: i32, %arg1: memref<8x128xf32, #tpu.memory_space<vmem>>, %arg2: memref<8x128xf32, #tpu.memory_space<vmem>>, %arg3: memref<1x1x8xf32, #tpu.memory_space<vmem>>, %arg4: memref<1x1x8xf32, #tpu.memory_space<vmem>>, %arg5: memref<128x384xbf16, #tpu.memory_space<vmem>>, %arg6: memref<1x384xf32, #tpu.memory_space<vmem>>, %arg7: memref<128x128xbf16, #tpu.memory_space<vmem>>, %arg8: memref<1x128xf32, #tpu.memory_space<vmem>>, %arg9: memref<1x128xf32, #tpu.memory_space<vmem>>, %arg10: memref<1x128xf32, #tpu.memory_space<vmem>>, %arg11: memref<128x128xbf16, #tpu.memory_space<vmem>>, %arg12: memref<1x128xf32, #tpu.memory_space<vmem>>, %arg13: memref<128x256xbf16, #tpu.memory_space<vmem>>, %arg14: memref<1x256xf32, #tpu.memory_space<vmem>>, %arg15: memref<128x128xbf16, #tpu.memory_space<vmem>>, %arg16: memref<1x128xf32, #tpu.memory_space<vmem>>, %arg17: memref<1x128xf32, #tpu.memory_space<vmem>>, %arg18: memref<1x128xf32, #tpu.memory_space<vmem>>, %arg19: memref<128x512xbf16, #tpu.memory_space<vmem>>, %arg20: memref<1x512xf32, #tpu.memory_space<vmem>>, %arg21: memref<512x128xbf16, #tpu.memory_space<vmem>>, %arg22: memref<1x128xf32, #tpu.memory_space<vmem>>, %arg23: memref<1x128xf32, #tpu.memory_space<vmem>>, %arg24: memref<1x128xf32, #tpu.memory_space<vmem>>, %arg25: memref<8x128xbf16, #tpu.memory_space<vmem>>) attributes {dimension_semantics = [#tpu.dimension_semantics<parallel>], iteration_bounds = array<i64: 2>, scalar_prefetch = 0 : i64, scratch_operands = 0 : i64, tpu.core_type = #tpu.core_type<tc>, window_params = [{transform_indices = @transform_0, window_bounds = array<i64: 8, 128>}, {transform_indices = @transform_1, window_bounds = array<i64: 8, 128>}, {transform_indices = @transform_2, window_bounds = array<i64: 1, 1, 8>}, {transform_indices = @transform_3, window_bounds = array<i64: 1, 1, 8>}, {pipeline_mode = #tpu.pipeline_mode<synchronous>, transform_indices = @transform_4, window_bounds = array<i64: 128, 384>}, {pipeline_mode = #tpu.pipeline_mode<synchronous>, transform_indices = @transform_5, window_bounds = array<i64: 1, 384>}, {pipeline_mode = #tpu.pipeline_mode<synchronous>, transform_indices = @transform_6, window_bounds = array<i64: 128, 128>}, {pipeline_mode = #tpu.pipeline_mode<synchronous>, transform_indices = @transform_7, window_bounds = array<i64: 1, 128>}, {pipeline_mode = #tpu.pipeline_mode<synchronous>, transform_indices = @transform_8, window_bounds = array<i64: 1, 128>}, {pipeline_mode = #tpu.pipeline_mode<synchronous>, transform_indices = @transform_9, window_bounds = array<i64: 1, 128>}, {pipeline_mode = #tpu.pipeline_mode<synchronous>, transform_indices = @transform_10, window_bounds = array<i64: 128, 128>}, {pipeline_mode = #tpu.pipeline_mode<synchronous>, transform_indices = @transform_11, window_bounds = array<i64: 1, 128>}, {pipeline_mode = #tpu.pipeline_mode<synchronous>, transform_indices = @transform_12, window_bounds = array<i64: 128, 256>}, {pipeline_mode = #tpu.pipeline_mode<synchronous>, transform_indices = @transform_13, window_bounds = array<i64: 1, 256>}, {pipeline_mode = #tpu.pipeline_mode<synchronous>, transform_indices = @transform_14, window_bounds = array<i64: 128, 128>}, {pipeline_mode = #tpu.pipeline_mode<synchronous>, transform_indices = @transform_15, window_bounds = array<i64: 1, 128>}, {pipeline_mode = #tpu.pipeline_mode<synchronous>, transform_indices = @transform_16, window_bounds = array<i64: 1, 128>}, {pipeline_mode = #tpu.pipeline_mode<synchronous>, transform_indices = @transform_17, window_bounds = array<i64: 1, 128>}, {pipeline_mode = #tpu.pipeline_mode<synchronous>, transform_indices = @transform_18, window_bounds = array<i64: 128, 512>}, {pipeline_mode = #tpu.pipeline_mode<synchronous>, transform_indices = @transform_19, window_bounds = array<i64: 1, 512>}, {pipeline_mode = #tpu.pipeline_mode<synchronous>, transform_indices = @transform_20, window_bounds = array<i64: 512, 128>}, {pipeline_mode = #tpu.pipeline_mode<synchronous>, transform_indices = @transform_21, window_bounds = array<i64: 1, 128>}, {pipeline_mode = #tpu.pipeline_mode<synchronous>, transform_indices = @transform_22, window_bounds = array<i64: 1, 128>}, {pipeline_mode = #tpu.pipeline_mode<synchronous>, transform_indices = @transform_23, window_bounds = array<i64: 1, 128>}, {transform_indices = @transform_24, window_bounds = array<i64: 8, 128>}]} {
    %c0 = arith.constant 0 : index
    %c0_0 = arith.constant 0 : index
    %0 = vector.load %arg1[%c0, %c0_0] : memref<8x128xf32, #tpu.memory_space<vmem>>, vector<8x128xf32>
    %c0_1 = arith.constant 0 : index
    %c0_2 = arith.constant 0 : index
    %1 = vector.load %arg2[%c0_1, %c0_2] : memref<8x128xf32, #tpu.memory_space<vmem>>, vector<8x128xf32>
    %2 = tpu.iota {dimensions = array<i32: 0>} : vector<8x8xi32>
    %3 = tpu.iota {dimensions = array<i32: 1>} : vector<8x8xi32>
    %4 = arith.cmpi sle, %3, %2 : vector<8x8xi32>
    %cst = arith.constant 0.000000e+00 : f32
    %cst_3 = arith.constant -1.000000e+30 : f32
    %5 = vector.broadcast %cst : f32 to vector<8x8xf32>
    %6 = vector.broadcast %cst_3 : f32 to vector<8x8xf32>
    %7 = arith.select %4, %5, %6 : vector<8x8xi1>, vector<8x8xf32>
    %8 = vector.shape_cast %7 : vector<8x8xf32> to vector<1x8x8xf32>
    %c0_4 = arith.constant 0 : index
    %c0_5 = arith.constant 0 : index
    %c0_6 = arith.constant 0 : index
    %9 = vector.load %arg3[%c0_4, %c0_5, %c0_6] : memref<1x1x8xf32, #tpu.memory_space<vmem>>, vector<1x1x8xf32>
    %10 = vector.broadcast %9 : vector<1x1x8xf32> to vector<1x8x8xf32>
    %11 = arith.addf %8, %10 : vector<1x8x8xf32>
    %c0_7 = arith.constant 0 : index
    %c0_8 = arith.constant 0 : index
    %c0_9 = arith.constant 0 : index
    %12 = vector.load %arg4[%c0_7, %c0_8, %c0_9] : memref<1x1x8xf32, #tpu.memory_space<vmem>>, vector<1x1x8xf32>
    %cst_10 = arith.constant 0.000000e+00 : f32
    %13 = vector.broadcast %cst_10 : f32 to vector<1x1x8xf32>
    %14 = arith.cmpf ogt, %12, %13 : vector<1x1x8xf32>
    %cst_11 = arith.constant -1.000000e+30 : f32
    %cst_12 = arith.constant 0.000000e+00 : f32
    %15 = vector.broadcast %cst_11 : f32 to vector<1x1x8xf32>
    %16 = vector.broadcast %cst_12 : f32 to vector<1x1x8xf32>
    %17 = arith.select %14, %15, %16 : vector<1x1x8xi1>, vector<1x1x8xf32>
    %18 = arith.truncf %0 : vector<8x128xf32> to vector<8x128xbf16>
    %c0_13 = arith.constant 0 : index
    %c0_14 = arith.constant 0 : index
    %19 = vector.load %arg5[%c0_13, %c0_14] : memref<128x384xbf16, #tpu.memory_space<vmem>>, vector<128x384xbf16>
    %cst_15 = arith.constant dense<0.000000e+00> : vector<8x384xf32>
    %20 = tpu.matmul %18, %19, %cst_15 {dimension_numbers = #tpu.dot_dimension_numbers<[1], [0], [0], [1], [0, 0, 1, 1], [], []>} : vector<8x128xbf16>, vector<128x384xbf16>, vector<8x384xf32> -> vector<8x384xf32>
    %c0_16 = arith.constant 0 : index
    %c0_17 = arith.constant 0 : index
    %21 = vector.load %arg6[%c0_16, %c0_17] : memref<1x384xf32, #tpu.memory_space<vmem>>, vector<1x384xf32>
    %22 = vector.broadcast %21 : vector<1x384xf32> to vector<8x384xf32>
    %23 = arith.addf %20, %22 : vector<8x384xf32>
    %24 = vector.extract_strided_slice %23 {offsets = [0, 0], sizes = [8, 128], strides = [1, 1]} : vector<8x384xf32> to vector<8x128xf32>
    %25 = vector.extract_strided_slice %23 {offsets = [0, 128], sizes = [8, 128], strides = [1, 1]} : vector<8x384xf32> to vector<8x128xf32>
    %26 = vector.extract_strided_slice %23 {offsets = [0, 256], sizes = [8, 128], strides = [1, 1]} : vector<8x384xf32> to vector<8x128xf32>
    %c0_18 = arith.constant 0 : index
    %c0_19 = arith.constant 0 : index
    %27 = vector.load %arg7[%c0_18, %c0_19] : memref<128x128xbf16, #tpu.memory_space<vmem>>, vector<128x128xbf16>
    %c0_20 = arith.constant 0 : index
    %c0_21 = arith.constant 0 : index
    %28 = vector.load %arg8[%c0_20, %c0_21] : memref<1x128xf32, #tpu.memory_space<vmem>>, vector<1x128xf32>
    %29 = vector.shape_cast %24 : vector<8x128xf32> to vector<1x8x128xf32>
    %30 = arith.truncf %29 : vector<1x8x128xf32> to vector<1x8x128xbf16>
    %31 = vector.shape_cast %25 : vector<8x128xf32> to vector<1x8x128xf32>
    %32 = arith.truncf %31 : vector<1x8x128xf32> to vector<1x8x128xbf16>
    %33 = vector.shape_cast %26 : vector<8x128xf32> to vector<1x8x128xf32>
    %34 = arith.truncf %33 : vector<1x8x128xf32> to vector<1x8x128xbf16>
    %35 = vector.extract_strided_slice %30 {offsets = [0, 0, 0], sizes = [1, 8, 32], strides = [1, 1, 1]} : vector<1x8x128xbf16> to vector<1x8x32xbf16>
    %36 = vector.extract_strided_slice %32 {offsets = [0, 0, 0], sizes = [1, 8, 32], strides = [1, 1, 1]} : vector<1x8x128xbf16> to vector<1x8x32xbf16>
    %37 = vector.extract_strided_slice %34 {offsets = [0, 0, 0], sizes = [1, 8, 32], strides = [1, 1, 1]} : vector<1x8x128xbf16> to vector<1x8x32xbf16>
    %cst_22 = arith.constant dense<0.000000e+00> : vector<1x8x8xf32>
    %38 = tpu.matmul %35, %36, %cst_22 {dimension_numbers = #tpu.dot_dimension_numbers<[2], [2], [1], [1], [0, 0, 0, 1, 1, 1], [0], [0]>} : vector<1x8x32xbf16>, vector<1x8x32xbf16>, vector<1x8x8xf32> -> vector<1x8x8xf32>
    %39 = arith.addf %38, %11 : vector<1x8x8xf32>
    %cst_23 = arith.constant dense<0xFF800000> : vector<1x8xf32>
    %40 = vector.multi_reduction <maximumf>, %39, %cst_23 [2] : vector<1x8x8xf32> to vector<1x8xf32>
    %41 = vector.shape_cast %40 : vector<1x8xf32> to vector<1x8x1xf32>
    %42 = vector.broadcast %41 : vector<1x8x1xf32> to vector<1x8x8xf32>
    %43 = arith.subf %39, %42 : vector<1x8x8xf32>
    %44 = math.exp %43 : vector<1x8x8xf32>
    %cst_24 = arith.constant dense<0.000000e+00> : vector<1x8xf32>
    %45 = vector.multi_reduction <add>, %44, %cst_24 [2] : vector<1x8x8xf32> to vector<1x8xf32>
    %46 = vector.shape_cast %45 : vector<1x8xf32> to vector<1x8x1xf32>
    %47 = tpu.reciprocal %46 {approx = true} : vector<1x8x1xf32> -> vector<1x8x1xf32>
    %48 = vector.broadcast %47 : vector<1x8x1xf32> to vector<1x8x8xf32>
    %49 = arith.mulf %44, %48 : vector<1x8x8xf32>
    %50 = arith.truncf %49 : vector<1x8x8xf32> to vector<1x8x8xbf16>
    %cst_25 = arith.constant dense<0.000000e+00> : vector<1x8x32xf32>
    %51 = tpu.matmul %50, %37, %cst_25 {dimension_numbers = #tpu.dot_dimension_numbers<[2], [1], [1], [2], [0, 0, 0, 1, 1, 2], [0], [0]>} : vector<1x8x8xbf16>, vector<1x8x32xbf16>, vector<1x8x32xf32> -> vector<1x8x32xf32>
    %52 = vector.extract_strided_slice %30 {offsets = [0, 0, 32], sizes = [1, 8, 32], strides = [1, 1, 1]} : vector<1x8x128xbf16> to vector<1x8x32xbf16>
    %53 = vector.extract_strided_slice %32 {offsets = [0, 0, 32], sizes = [1, 8, 32], strides = [1, 1, 1]} : vector<1x8x128xbf16> to vector<1x8x32xbf16>
    %54 = vector.extract_strided_slice %34 {offsets = [0, 0, 32], sizes = [1, 8, 32], strides = [1, 1, 1]} : vector<1x8x128xbf16> to vector<1x8x32xbf16>
    %cst_26 = arith.constant dense<0.000000e+00> : vector<1x8x8xf32>
    %55 = tpu.matmul %52, %53, %cst_26 {dimension_numbers = #tpu.dot_dimension_numbers<[2], [2], [1], [1], [0, 0, 0, 1, 1, 1], [0], [0]>} : vector<1x8x32xbf16>, vector<1x8x32xbf16>, vector<1x8x8xf32> -> vector<1x8x8xf32>
    %56 = arith.addf %55, %11 : vector<1x8x8xf32>
    %cst_27 = arith.constant dense<0xFF800000> : vector<1x8xf32>
    %57 = vector.multi_reduction <maximumf>, %56, %cst_27 [2] : vector<1x8x8xf32> to vector<1x8xf32>
    %58 = vector.shape_cast %57 : vector<1x8xf32> to vector<1x8x1xf32>
    %59 = vector.broadcast %58 : vector<1x8x1xf32> to vector<1x8x8xf32>
    %60 = arith.subf %56, %59 : vector<1x8x8xf32>
    %61 = math.exp %60 : vector<1x8x8xf32>
    %cst_28 = arith.constant dense<0.000000e+00> : vector<1x8xf32>
    %62 = vector.multi_reduction <add>, %61, %cst_28 [2] : vector<1x8x8xf32> to vector<1x8xf32>
    %63 = vector.shape_cast %62 : vector<1x8xf32> to vector<1x8x1xf32>
    %64 = tpu.reciprocal %63 {approx = true} : vector<1x8x1xf32> -> vector<1x8x1xf32>
    %65 = vector.broadcast %64 : vector<1x8x1xf32> to vector<1x8x8xf32>
    %66 = arith.mulf %61, %65 : vector<1x8x8xf32>
    %67 = arith.truncf %66 : vector<1x8x8xf32> to vector<1x8x8xbf16>
    %cst_29 = arith.constant dense<0.000000e+00> : vector<1x8x32xf32>
    %68 = tpu.matmul %67, %54, %cst_29 {dimension_numbers = #tpu.dot_dimension_numbers<[2], [1], [1], [2], [0, 0, 0, 1, 1, 2], [0], [0]>} : vector<1x8x8xbf16>, vector<1x8x32xbf16>, vector<1x8x32xf32> -> vector<1x8x32xf32>
    %69 = vector.extract_strided_slice %30 {offsets = [0, 0, 64], sizes = [1, 8, 32], strides = [1, 1, 1]} : vector<1x8x128xbf16> to vector<1x8x32xbf16>
    %70 = vector.extract_strided_slice %32 {offsets = [0, 0, 64], sizes = [1, 8, 32], strides = [1, 1, 1]} : vector<1x8x128xbf16> to vector<1x8x32xbf16>
    %71 = vector.extract_strided_slice %34 {offsets = [0, 0, 64], sizes = [1, 8, 32], strides = [1, 1, 1]} : vector<1x8x128xbf16> to vector<1x8x32xbf16>
    %cst_30 = arith.constant dense<0.000000e+00> : vector<1x8x8xf32>
    %72 = tpu.matmul %69, %70, %cst_30 {dimension_numbers = #tpu.dot_dimension_numbers<[2], [2], [1], [1], [0, 0, 0, 1, 1, 1], [0], [0]>} : vector<1x8x32xbf16>, vector<1x8x32xbf16>, vector<1x8x8xf32> -> vector<1x8x8xf32>
    %73 = arith.addf %72, %11 : vector<1x8x8xf32>
    %cst_31 = arith.constant dense<0xFF800000> : vector<1x8xf32>
    %74 = vector.multi_reduction <maximumf>, %73, %cst_31 [2] : vector<1x8x8xf32> to vector<1x8xf32>
    %75 = vector.shape_cast %74 : vector<1x8xf32> to vector<1x8x1xf32>
    %76 = vector.broadcast %75 : vector<1x8x1xf32> to vector<1x8x8xf32>
    %77 = arith.subf %73, %76 : vector<1x8x8xf32>
    %78 = math.exp %77 : vector<1x8x8xf32>
    %cst_32 = arith.constant dense<0.000000e+00> : vector<1x8xf32>
    %79 = vector.multi_reduction <add>, %78, %cst_32 [2] : vector<1x8x8xf32> to vector<1x8xf32>
    %80 = vector.shape_cast %79 : vector<1x8xf32> to vector<1x8x1xf32>
    %81 = tpu.reciprocal %80 {approx = true} : vector<1x8x1xf32> -> vector<1x8x1xf32>
    %82 = vector.broadcast %81 : vector<1x8x1xf32> to vector<1x8x8xf32>
    %83 = arith.mulf %78, %82 : vector<1x8x8xf32>
    %84 = arith.truncf %83 : vector<1x8x8xf32> to vector<1x8x8xbf16>
    %cst_33 = arith.constant dense<0.000000e+00> : vector<1x8x32xf32>
    %85 = tpu.matmul %84, %71, %cst_33 {dimension_numbers = #tpu.dot_dimension_numbers<[2], [1], [1], [2], [0, 0, 0, 1, 1, 2], [0], [0]>} : vector<1x8x8xbf16>, vector<1x8x32xbf16>, vector<1x8x32xf32> -> vector<1x8x32xf32>
    %86 = vector.extract_strided_slice %30 {offsets = [0, 0, 96], sizes = [1, 8, 32], strides = [1, 1, 1]} : vector<1x8x128xbf16> to vector<1x8x32xbf16>
    %87 = vector.extract_strided_slice %32 {offsets = [0, 0, 96], sizes = [1, 8, 32], strides = [1, 1, 1]} : vector<1x8x128xbf16> to vector<1x8x32xbf16>
    %88 = vector.extract_strided_slice %34 {offsets = [0, 0, 96], sizes = [1, 8, 32], strides = [1, 1, 1]} : vector<1x8x128xbf16> to vector<1x8x32xbf16>
    %cst_34 = arith.constant dense<0.000000e+00> : vector<1x8x8xf32>
    %89 = tpu.matmul %86, %87, %cst_34 {dimension_numbers = #tpu.dot_dimension_numbers<[2], [2], [1], [1], [0, 0, 0, 1, 1, 1], [0], [0]>} : vector<1x8x32xbf16>, vector<1x8x32xbf16>, vector<1x8x8xf32> -> vector<1x8x8xf32>
    %90 = arith.addf %89, %11 : vector<1x8x8xf32>
    %cst_35 = arith.constant dense<0xFF800000> : vector<1x8xf32>
    %91 = vector.multi_reduction <maximumf>, %90, %cst_35 [2] : vector<1x8x8xf32> to vector<1x8xf32>
    %92 = vector.shape_cast %91 : vector<1x8xf32> to vector<1x8x1xf32>
    %93 = vector.broadcast %92 : vector<1x8x1xf32> to vector<1x8x8xf32>
    %94 = arith.subf %90, %93 : vector<1x8x8xf32>
    %95 = math.exp %94 : vector<1x8x8xf32>
    %cst_36 = arith.constant dense<0.000000e+00> : vector<1x8xf32>
    %96 = vector.multi_reduction <add>, %95, %cst_36 [2] : vector<1x8x8xf32> to vector<1x8xf32>
    %97 = vector.shape_cast %96 : vector<1x8xf32> to vector<1x8x1xf32>
    %98 = tpu.reciprocal %97 {approx = true} : vector<1x8x1xf32> -> vector<1x8x1xf32>
    %99 = vector.broadcast %98 : vector<1x8x1xf32> to vector<1x8x8xf32>
    %100 = arith.mulf %95, %99 : vector<1x8x8xf32>
    %101 = arith.truncf %100 : vector<1x8x8xf32> to vector<1x8x8xbf16>
    %cst_37 = arith.constant dense<0.000000e+00> : vector<1x8x32xf32>
    %102 = tpu.matmul %101, %88, %cst_37 {dimension_numbers = #tpu.dot_dimension_numbers<[2], [1], [1], [2], [0, 0, 0, 1, 1, 2], [0], [0]>} : vector<1x8x8xbf16>, vector<1x8x32xbf16>, vector<1x8x32xf32> -> vector<1x8x32xf32>
    %103 = tpu.concatenate %51, %68, %85, %102 in 2 : vector<1x8x32xf32>, vector<1x8x32xf32>, vector<1x8x32xf32>, vector<1x8x32xf32> -> vector<1x8x128xf32>
    %104 = vector.shape_cast %103 : vector<1x8x128xf32> to vector<8x128xf32>
    %105 = arith.truncf %104 : vector<8x128xf32> to vector<8x128xbf16>
    %cst_38 = arith.constant dense<0.000000e+00> : vector<8x128xf32>
    %106 = tpu.matmul %105, %27, %cst_38 {dimension_numbers = #tpu.dot_dimension_numbers<[1], [0], [0], [1], [0, 0, 1, 1], [], []>} : vector<8x128xbf16>, vector<128x128xbf16>, vector<8x128xf32> -> vector<8x128xf32>
    %107 = vector.broadcast %28 : vector<1x128xf32> to vector<8x128xf32>
    %108 = arith.addf %106, %107 : vector<8x128xf32>
    %109 = arith.addf %0, %108 : vector<8x128xf32>
    %c0_39 = arith.constant 0 : index
    %c0_40 = arith.constant 0 : index
    %110 = vector.load %arg9[%c0_39, %c0_40] : memref<1x128xf32, #tpu.memory_space<vmem>>, vector<1x128xf32>
    %c0_41 = arith.constant 0 : index
    %c0_42 = arith.constant 0 : index
    %111 = vector.load %arg10[%c0_41, %c0_42] : memref<1x128xf32, #tpu.memory_space<vmem>>, vector<1x128xf32>
    %cst_43 = arith.constant dense<0.000000e+00> : vector<8xf32>
    %112 = vector.multi_reduction <add>, %109, %cst_43 [1] : vector<8x128xf32> to vector<8xf32>
    %113 = vector.shape_cast %112 : vector<8xf32> to vector<8x1xf32>
    %cst_44 = arith.constant 1.280000e+02 : f32
    %114 = vector.broadcast %cst_44 : f32 to vector<8x1xf32>
    %115 = arith.divf %113, %114 : vector<8x1xf32>
    %116 = vector.broadcast %115 : vector<8x1xf32> to vector<8x128xf32>
    %117 = arith.subf %109, %116 : vector<8x128xf32>
    %118 = arith.mulf %117, %117 : vector<8x128xf32>
    %cst_45 = arith.constant dense<0.000000e+00> : vector<8xf32>
    %119 = vector.multi_reduction <add>, %118, %cst_45 [1] : vector<8x128xf32> to vector<8xf32>
    %120 = vector.shape_cast %119 : vector<8xf32> to vector<8x1xf32>
    %cst_46 = arith.constant 1.280000e+02 : f32
    %121 = vector.broadcast %cst_46 : f32 to vector<8x1xf32>
    %122 = arith.divf %120, %121 : vector<8x1xf32>
    %cst_47 = arith.constant 9.99999974E-6 : f32
    %123 = vector.broadcast %cst_47 : f32 to vector<8x1xf32>
    %124 = arith.addf %122, %123 : vector<8x1xf32>
    %125 = math.rsqrt %124 : vector<8x1xf32>
    %126 = vector.broadcast %125 : vector<8x1xf32> to vector<8x128xf32>
    %127 = arith.mulf %117, %126 : vector<8x128xf32>
    %128 = vector.broadcast %110 : vector<1x128xf32> to vector<8x128xf32>
    %129 = arith.mulf %127, %128 : vector<8x128xf32>
    %130 = vector.broadcast %111 : vector<1x128xf32> to vector<8x128xf32>
    %131 = arith.addf %129, %130 : vector<8x128xf32>
    %132 = arith.truncf %1 : vector<8x128xf32> to vector<8x128xbf16>
    %c0_48 = arith.constant 0 : index
    %c0_49 = arith.constant 0 : index
    %133 = vector.load %arg13[%c0_48, %c0_49] : memref<128x256xbf16, #tpu.memory_space<vmem>>, vector<128x256xbf16>
    %cst_50 = arith.constant dense<0.000000e+00> : vector<8x256xf32>
    %134 = tpu.matmul %132, %133, %cst_50 {dimension_numbers = #tpu.dot_dimension_numbers<[1], [0], [0], [1], [0, 0, 1, 1], [], []>} : vector<8x128xbf16>, vector<128x256xbf16>, vector<8x256xf32> -> vector<8x256xf32>
    %c0_51 = arith.constant 0 : index
    %c0_52 = arith.constant 0 : index
    %135 = vector.load %arg14[%c0_51, %c0_52] : memref<1x256xf32, #tpu.memory_space<vmem>>, vector<1x256xf32>
    %136 = vector.broadcast %135 : vector<1x256xf32> to vector<8x256xf32>
    %137 = arith.addf %134, %136 : vector<8x256xf32>
    %138 = arith.truncf %131 : vector<8x128xf32> to vector<8x128xbf16>
    %c0_53 = arith.constant 0 : index
    %c0_54 = arith.constant 0 : index
    %139 = vector.load %arg11[%c0_53, %c0_54] : memref<128x128xbf16, #tpu.memory_space<vmem>>, vector<128x128xbf16>
    %cst_55 = arith.constant dense<0.000000e+00> : vector<8x128xf32>
    %140 = tpu.matmul %138, %139, %cst_55 {dimension_numbers = #tpu.dot_dimension_numbers<[1], [0], [0], [1], [0, 0, 1, 1], [], []>} : vector<8x128xbf16>, vector<128x128xbf16>, vector<8x128xf32> -> vector<8x128xf32>
    %c0_56 = arith.constant 0 : index
    %c0_57 = arith.constant 0 : index
    %141 = vector.load %arg12[%c0_56, %c0_57] : memref<1x128xf32, #tpu.memory_space<vmem>>, vector<1x128xf32>
    %142 = vector.broadcast %141 : vector<1x128xf32> to vector<8x128xf32>
    %143 = arith.addf %140, %142 : vector<8x128xf32>
    %144 = vector.extract_strided_slice %137 {offsets = [0, 0], sizes = [8, 128], strides = [1, 1]} : vector<8x256xf32> to vector<8x128xf32>
    %145 = vector.extract_strided_slice %137 {offsets = [0, 128], sizes = [8, 128], strides = [1, 1]} : vector<8x256xf32> to vector<8x128xf32>
    %c0_58 = arith.constant 0 : index
    %c0_59 = arith.constant 0 : index
    %146 = vector.load %arg15[%c0_58, %c0_59] : memref<128x128xbf16, #tpu.memory_space<vmem>>, vector<128x128xbf16>
    %c0_60 = arith.constant 0 : index
    %c0_61 = arith.constant 0 : index
    %147 = vector.load %arg16[%c0_60, %c0_61] : memref<1x128xf32, #tpu.memory_space<vmem>>, vector<1x128xf32>
    %148 = vector.shape_cast %143 : vector<8x128xf32> to vector<1x8x128xf32>
    %149 = arith.truncf %148 : vector<1x8x128xf32> to vector<1x8x128xbf16>
    %150 = vector.shape_cast %144 : vector<8x128xf32> to vector<1x8x128xf32>
    %151 = arith.truncf %150 : vector<1x8x128xf32> to vector<1x8x128xbf16>
    %152 = vector.shape_cast %145 : vector<8x128xf32> to vector<1x8x128xf32>
    %153 = arith.truncf %152 : vector<1x8x128xf32> to vector<1x8x128xbf16>
    %154 = vector.extract_strided_slice %149 {offsets = [0, 0, 0], sizes = [1, 8, 32], strides = [1, 1, 1]} : vector<1x8x128xbf16> to vector<1x8x32xbf16>
    %155 = vector.extract_strided_slice %151 {offsets = [0, 0, 0], sizes = [1, 8, 32], strides = [1, 1, 1]} : vector<1x8x128xbf16> to vector<1x8x32xbf16>
    %156 = vector.extract_strided_slice %153 {offsets = [0, 0, 0], sizes = [1, 8, 32], strides = [1, 1, 1]} : vector<1x8x128xbf16> to vector<1x8x32xbf16>
    %cst_62 = arith.constant dense<0.000000e+00> : vector<1x8x8xf32>
    %157 = tpu.matmul %154, %155, %cst_62 {dimension_numbers = #tpu.dot_dimension_numbers<[2], [2], [1], [1], [0, 0, 0, 1, 1, 1], [0], [0]>} : vector<1x8x32xbf16>, vector<1x8x32xbf16>, vector<1x8x8xf32> -> vector<1x8x8xf32>
    %158 = vector.broadcast %17 : vector<1x1x8xf32> to vector<1x8x8xf32>
    %159 = arith.addf %157, %158 : vector<1x8x8xf32>
    %cst_63 = arith.constant dense<0xFF800000> : vector<1x8xf32>
    %160 = vector.multi_reduction <maximumf>, %159, %cst_63 [2] : vector<1x8x8xf32> to vector<1x8xf32>
    %161 = vector.shape_cast %160 : vector<1x8xf32> to vector<1x8x1xf32>
    %162 = vector.broadcast %161 : vector<1x8x1xf32> to vector<1x8x8xf32>
    %163 = arith.subf %159, %162 : vector<1x8x8xf32>
    %164 = math.exp %163 : vector<1x8x8xf32>
    %cst_64 = arith.constant dense<0.000000e+00> : vector<1x8xf32>
    %165 = vector.multi_reduction <add>, %164, %cst_64 [2] : vector<1x8x8xf32> to vector<1x8xf32>
    %166 = vector.shape_cast %165 : vector<1x8xf32> to vector<1x8x1xf32>
    %167 = tpu.reciprocal %166 {approx = true} : vector<1x8x1xf32> -> vector<1x8x1xf32>
    %168 = vector.broadcast %167 : vector<1x8x1xf32> to vector<1x8x8xf32>
    %169 = arith.mulf %164, %168 : vector<1x8x8xf32>
    %170 = arith.truncf %169 : vector<1x8x8xf32> to vector<1x8x8xbf16>
    %cst_65 = arith.constant dense<0.000000e+00> : vector<1x8x32xf32>
    %171 = tpu.matmul %170, %156, %cst_65 {dimension_numbers = #tpu.dot_dimension_numbers<[2], [1], [1], [2], [0, 0, 0, 1, 1, 2], [0], [0]>} : vector<1x8x8xbf16>, vector<1x8x32xbf16>, vector<1x8x32xf32> -> vector<1x8x32xf32>
    %172 = vector.extract_strided_slice %149 {offsets = [0, 0, 32], sizes = [1, 8, 32], strides = [1, 1, 1]} : vector<1x8x128xbf16> to vector<1x8x32xbf16>
    %173 = vector.extract_strided_slice %151 {offsets = [0, 0, 32], sizes = [1, 8, 32], strides = [1, 1, 1]} : vector<1x8x128xbf16> to vector<1x8x32xbf16>
    %174 = vector.extract_strided_slice %153 {offsets = [0, 0, 32], sizes = [1, 8, 32], strides = [1, 1, 1]} : vector<1x8x128xbf16> to vector<1x8x32xbf16>
    %cst_66 = arith.constant dense<0.000000e+00> : vector<1x8x8xf32>
    %175 = tpu.matmul %172, %173, %cst_66 {dimension_numbers = #tpu.dot_dimension_numbers<[2], [2], [1], [1], [0, 0, 0, 1, 1, 1], [0], [0]>} : vector<1x8x32xbf16>, vector<1x8x32xbf16>, vector<1x8x8xf32> -> vector<1x8x8xf32>
    %176 = vector.broadcast %17 : vector<1x1x8xf32> to vector<1x8x8xf32>
    %177 = arith.addf %175, %176 : vector<1x8x8xf32>
    %cst_67 = arith.constant dense<0xFF800000> : vector<1x8xf32>
    %178 = vector.multi_reduction <maximumf>, %177, %cst_67 [2] : vector<1x8x8xf32> to vector<1x8xf32>
    %179 = vector.shape_cast %178 : vector<1x8xf32> to vector<1x8x1xf32>
    %180 = vector.broadcast %179 : vector<1x8x1xf32> to vector<1x8x8xf32>
    %181 = arith.subf %177, %180 : vector<1x8x8xf32>
    %182 = math.exp %181 : vector<1x8x8xf32>
    %cst_68 = arith.constant dense<0.000000e+00> : vector<1x8xf32>
    %183 = vector.multi_reduction <add>, %182, %cst_68 [2] : vector<1x8x8xf32> to vector<1x8xf32>
    %184 = vector.shape_cast %183 : vector<1x8xf32> to vector<1x8x1xf32>
    %185 = tpu.reciprocal %184 {approx = true} : vector<1x8x1xf32> -> vector<1x8x1xf32>
    %186 = vector.broadcast %185 : vector<1x8x1xf32> to vector<1x8x8xf32>
    %187 = arith.mulf %182, %186 : vector<1x8x8xf32>
    %188 = arith.truncf %187 : vector<1x8x8xf32> to vector<1x8x8xbf16>
    %cst_69 = arith.constant dense<0.000000e+00> : vector<1x8x32xf32>
    %189 = tpu.matmul %188, %174, %cst_69 {dimension_numbers = #tpu.dot_dimension_numbers<[2], [1], [1], [2], [0, 0, 0, 1, 1, 2], [0], [0]>} : vector<1x8x8xbf16>, vector<1x8x32xbf16>, vector<1x8x32xf32> -> vector<1x8x32xf32>
    %190 = vector.extract_strided_slice %149 {offsets = [0, 0, 64], sizes = [1, 8, 32], strides = [1, 1, 1]} : vector<1x8x128xbf16> to vector<1x8x32xbf16>
    %191 = vector.extract_strided_slice %151 {offsets = [0, 0, 64], sizes = [1, 8, 32], strides = [1, 1, 1]} : vector<1x8x128xbf16> to vector<1x8x32xbf16>
    %192 = vector.extract_strided_slice %153 {offsets = [0, 0, 64], sizes = [1, 8, 32], strides = [1, 1, 1]} : vector<1x8x128xbf16> to vector<1x8x32xbf16>
    %cst_70 = arith.constant dense<0.000000e+00> : vector<1x8x8xf32>
    %193 = tpu.matmul %190, %191, %cst_70 {dimension_numbers = #tpu.dot_dimension_numbers<[2], [2], [1], [1], [0, 0, 0, 1, 1, 1], [0], [0]>} : vector<1x8x32xbf16>, vector<1x8x32xbf16>, vector<1x8x8xf32> -> vector<1x8x8xf32>
    %194 = vector.broadcast %17 : vector<1x1x8xf32> to vector<1x8x8xf32>
    %195 = arith.addf %193, %194 : vector<1x8x8xf32>
    %cst_71 = arith.constant dense<0xFF800000> : vector<1x8xf32>
    %196 = vector.multi_reduction <maximumf>, %195, %cst_71 [2] : vector<1x8x8xf32> to vector<1x8xf32>
    %197 = vector.shape_cast %196 : vector<1x8xf32> to vector<1x8x1xf32>
    %198 = vector.broadcast %197 : vector<1x8x1xf32> to vector<1x8x8xf32>
    %199 = arith.subf %195, %198 : vector<1x8x8xf32>
    %200 = math.exp %199 : vector<1x8x8xf32>
    %cst_72 = arith.constant dense<0.000000e+00> : vector<1x8xf32>
    %201 = vector.multi_reduction <add>, %200, %cst_72 [2] : vector<1x8x8xf32> to vector<1x8xf32>
    %202 = vector.shape_cast %201 : vector<1x8xf32> to vector<1x8x1xf32>
    %203 = tpu.reciprocal %202 {approx = true} : vector<1x8x1xf32> -> vector<1x8x1xf32>
    %204 = vector.broadcast %203 : vector<1x8x1xf32> to vector<1x8x8xf32>
    %205 = arith.mulf %200, %204 : vector<1x8x8xf32>
    %206 = arith.truncf %205 : vector<1x8x8xf32> to vector<1x8x8xbf16>
    %cst_73 = arith.constant dense<0.000000e+00> : vector<1x8x32xf32>
    %207 = tpu.matmul %206, %192, %cst_73 {dimension_numbers = #tpu.dot_dimension_numbers<[2], [1], [1], [2], [0, 0, 0, 1, 1, 2], [0], [0]>} : vector<1x8x8xbf16>, vector<1x8x32xbf16>, vector<1x8x32xf32> -> vector<1x8x32xf32>
    %208 = vector.extract_strided_slice %149 {offsets = [0, 0, 96], sizes = [1, 8, 32], strides = [1, 1, 1]} : vector<1x8x128xbf16> to vector<1x8x32xbf16>
    %209 = vector.extract_strided_slice %151 {offsets = [0, 0, 96], sizes = [1, 8, 32], strides = [1, 1, 1]} : vector<1x8x128xbf16> to vector<1x8x32xbf16>
    %210 = vector.extract_strided_slice %153 {offsets = [0, 0, 96], sizes = [1, 8, 32], strides = [1, 1, 1]} : vector<1x8x128xbf16> to vector<1x8x32xbf16>
    %cst_74 = arith.constant dense<0.000000e+00> : vector<1x8x8xf32>
    %211 = tpu.matmul %208, %209, %cst_74 {dimension_numbers = #tpu.dot_dimension_numbers<[2], [2], [1], [1], [0, 0, 0, 1, 1, 1], [0], [0]>} : vector<1x8x32xbf16>, vector<1x8x32xbf16>, vector<1x8x8xf32> -> vector<1x8x8xf32>
    %212 = vector.broadcast %17 : vector<1x1x8xf32> to vector<1x8x8xf32>
    %213 = arith.addf %211, %212 : vector<1x8x8xf32>
    %cst_75 = arith.constant dense<0xFF800000> : vector<1x8xf32>
    %214 = vector.multi_reduction <maximumf>, %213, %cst_75 [2] : vector<1x8x8xf32> to vector<1x8xf32>
    %215 = vector.shape_cast %214 : vector<1x8xf32> to vector<1x8x1xf32>
    %216 = vector.broadcast %215 : vector<1x8x1xf32> to vector<1x8x8xf32>
    %217 = arith.subf %213, %216 : vector<1x8x8xf32>
    %218 = math.exp %217 : vector<1x8x8xf32>
    %cst_76 = arith.constant dense<0.000000e+00> : vector<1x8xf32>
    %219 = vector.multi_reduction <add>, %218, %cst_76 [2] : vector<1x8x8xf32> to vector<1x8xf32>
    %220 = vector.shape_cast %219 : vector<1x8xf32> to vector<1x8x1xf32>
    %221 = tpu.reciprocal %220 {approx = true} : vector<1x8x1xf32> -> vector<1x8x1xf32>
    %222 = vector.broadcast %221 : vector<1x8x1xf32> to vector<1x8x8xf32>
    %223 = arith.mulf %218, %222 : vector<1x8x8xf32>
    %224 = arith.truncf %223 : vector<1x8x8xf32> to vector<1x8x8xbf16>
    %cst_77 = arith.constant dense<0.000000e+00> : vector<1x8x32xf32>
    %225 = tpu.matmul %224, %210, %cst_77 {dimension_numbers = #tpu.dot_dimension_numbers<[2], [1], [1], [2], [0, 0, 0, 1, 1, 2], [0], [0]>} : vector<1x8x8xbf16>, vector<1x8x32xbf16>, vector<1x8x32xf32> -> vector<1x8x32xf32>
    %226 = tpu.concatenate %171, %189, %207, %225 in 2 : vector<1x8x32xf32>, vector<1x8x32xf32>, vector<1x8x32xf32>, vector<1x8x32xf32> -> vector<1x8x128xf32>
    %227 = vector.shape_cast %226 : vector<1x8x128xf32> to vector<8x128xf32>
    %228 = arith.truncf %227 : vector<8x128xf32> to vector<8x128xbf16>
    %cst_78 = arith.constant dense<0.000000e+00> : vector<8x128xf32>
    %229 = tpu.matmul %228, %146, %cst_78 {dimension_numbers = #tpu.dot_dimension_numbers<[1], [0], [0], [1], [0, 0, 1, 1], [], []>} : vector<8x128xbf16>, vector<128x128xbf16>, vector<8x128xf32> -> vector<8x128xf32>
    %230 = vector.broadcast %147 : vector<1x128xf32> to vector<8x128xf32>
    %231 = arith.addf %229, %230 : vector<8x128xf32>
    %232 = arith.addf %131, %231 : vector<8x128xf32>
    %c0_79 = arith.constant 0 : index
    %c0_80 = arith.constant 0 : index
    %233 = vector.load %arg17[%c0_79, %c0_80] : memref<1x128xf32, #tpu.memory_space<vmem>>, vector<1x128xf32>
    %c0_81 = arith.constant 0 : index
    %c0_82 = arith.constant 0 : index
    %234 = vector.load %arg18[%c0_81, %c0_82] : memref<1x128xf32, #tpu.memory_space<vmem>>, vector<1x128xf32>
    %cst_83 = arith.constant dense<0.000000e+00> : vector<8xf32>
    %235 = vector.multi_reduction <add>, %232, %cst_83 [1] : vector<8x128xf32> to vector<8xf32>
    %236 = vector.shape_cast %235 : vector<8xf32> to vector<8x1xf32>
    %cst_84 = arith.constant 1.280000e+02 : f32
    %237 = vector.broadcast %cst_84 : f32 to vector<8x1xf32>
    %238 = arith.divf %236, %237 : vector<8x1xf32>
    %239 = vector.broadcast %238 : vector<8x1xf32> to vector<8x128xf32>
    %240 = arith.subf %232, %239 : vector<8x128xf32>
    %241 = arith.mulf %240, %240 : vector<8x128xf32>
    %cst_85 = arith.constant dense<0.000000e+00> : vector<8xf32>
    %242 = vector.multi_reduction <add>, %241, %cst_85 [1] : vector<8x128xf32> to vector<8xf32>
    %243 = vector.shape_cast %242 : vector<8xf32> to vector<8x1xf32>
    %cst_86 = arith.constant 1.280000e+02 : f32
    %244 = vector.broadcast %cst_86 : f32 to vector<8x1xf32>
    %245 = arith.divf %243, %244 : vector<8x1xf32>
    %cst_87 = arith.constant 9.99999974E-6 : f32
    %246 = vector.broadcast %cst_87 : f32 to vector<8x1xf32>
    %247 = arith.addf %245, %246 : vector<8x1xf32>
    %248 = math.rsqrt %247 : vector<8x1xf32>
    %249 = vector.broadcast %248 : vector<8x1xf32> to vector<8x128xf32>
    %250 = arith.mulf %240, %249 : vector<8x128xf32>
    %251 = vector.broadcast %233 : vector<1x128xf32> to vector<8x128xf32>
    %252 = arith.mulf %250, %251 : vector<8x128xf32>
    %253 = vector.broadcast %234 : vector<1x128xf32> to vector<8x128xf32>
    %254 = arith.addf %252, %253 : vector<8x128xf32>
    %255 = arith.truncf %254 : vector<8x128xf32> to vector<8x128xbf16>
    %c0_88 = arith.constant 0 : index
    %c0_89 = arith.constant 0 : index
    %256 = vector.load %arg19[%c0_88, %c0_89] : memref<128x512xbf16, #tpu.memory_space<vmem>>, vector<128x512xbf16>
    %cst_90 = arith.constant dense<0.000000e+00> : vector<8x512xf32>
    %257 = tpu.matmul %255, %256, %cst_90 {dimension_numbers = #tpu.dot_dimension_numbers<[1], [0], [0], [1], [0, 0, 1, 1], [], []>} : vector<8x128xbf16>, vector<128x512xbf16>, vector<8x512xf32> -> vector<8x512xf32>
    %c0_91 = arith.constant 0 : index
    %c0_92 = arith.constant 0 : index
    %258 = vector.load %arg20[%c0_91, %c0_92] : memref<1x512xf32, #tpu.memory_space<vmem>>, vector<1x512xf32>
    %259 = vector.broadcast %258 : vector<1x512xf32> to vector<8x512xf32>
    %260 = arith.addf %257, %259 : vector<8x512xf32>
    %cst_93 = arith.constant 0.000000e+00 : f32
    %261 = vector.broadcast %cst_93 : f32 to vector<8x512xf32>
    %262 = arith.maximumf %260, %261 : vector<8x512xf32>
    %263 = arith.truncf %262 : vector<8x512xf32> to vector<8x512xbf16>
    %c0_94 = arith.constant 0 : index
    %c0_95 = arith.constant 0 : index
    %264 = vector.load %arg21[%c0_94, %c0_95] : memref<512x128xbf16, #tpu.memory_space<vmem>>, vector<512x128xbf16>
    %cst_96 = arith.constant dense<0.000000e+00> : vector<8x128xf32>
    %265 = tpu.matmul %263, %264, %cst_96 {dimension_numbers = #tpu.dot_dimension_numbers<[1], [0], [0], [1], [0, 0, 1, 1], [], []>} : vector<8x512xbf16>, vector<512x128xbf16>, vector<8x128xf32> -> vector<8x128xf32>
    %c0_97 = arith.constant 0 : index
    %c0_98 = arith.constant 0 : index
    %266 = vector.load %arg22[%c0_97, %c0_98] : memref<1x128xf32, #tpu.memory_space<vmem>>, vector<1x128xf32>
    %267 = vector.broadcast %266 : vector<1x128xf32> to vector<8x128xf32>
    %268 = arith.addf %265, %267 : vector<8x128xf32>
    %cst_99 = arith.constant 0.000000e+00 : f32
    %269 = vector.broadcast %cst_99 : f32 to vector<8x128xf32>
    %270 = arith.maximumf %268, %269 : vector<8x128xf32>
    %271 = arith.addf %270, %254 : vector<8x128xf32>
    %c0_100 = arith.constant 0 : index
    %c0_101 = arith.constant 0 : index
    %272 = vector.load %arg23[%c0_100, %c0_101] : memref<1x128xf32, #tpu.memory_space<vmem>>, vector<1x128xf32>
    %c0_102 = arith.constant 0 : index
    %c0_103 = arith.constant 0 : index
    %273 = vector.load %arg24[%c0_102, %c0_103] : memref<1x128xf32, #tpu.memory_space<vmem>>, vector<1x128xf32>
    %cst_104 = arith.constant dense<0.000000e+00> : vector<8xf32>
    %274 = vector.multi_reduction <add>, %271, %cst_104 [1] : vector<8x128xf32> to vector<8xf32>
    %275 = vector.shape_cast %274 : vector<8xf32> to vector<8x1xf32>
    %cst_105 = arith.constant 1.280000e+02 : f32
    %276 = vector.broadcast %cst_105 : f32 to vector<8x1xf32>
    %277 = arith.divf %275, %276 : vector<8x1xf32>
    %278 = vector.broadcast %277 : vector<8x1xf32> to vector<8x128xf32>
    %279 = arith.subf %271, %278 : vector<8x128xf32>
    %280 = arith.mulf %279, %279 : vector<8x128xf32>
    %cst_106 = arith.constant dense<0.000000e+00> : vector<8xf32>
    %281 = vector.multi_reduction <add>, %280, %cst_106 [1] : vector<8x128xf32> to vector<8xf32>
    %282 = vector.shape_cast %281 : vector<8xf32> to vector<8x1xf32>
    %cst_107 = arith.constant 1.280000e+02 : f32
    %283 = vector.broadcast %cst_107 : f32 to vector<8x1xf32>
    %284 = arith.divf %282, %283 : vector<8x1xf32>
    %cst_108 = arith.constant 9.99999974E-6 : f32
    %285 = vector.broadcast %cst_108 : f32 to vector<8x1xf32>
    %286 = arith.addf %284, %285 : vector<8x1xf32>
    %287 = math.rsqrt %286 : vector<8x1xf32>
    %288 = vector.broadcast %287 : vector<8x1xf32> to vector<8x128xf32>
    %289 = arith.mulf %279, %288 : vector<8x128xf32>
    %290 = vector.broadcast %272 : vector<1x128xf32> to vector<8x128xf32>
    %291 = arith.mulf %289, %290 : vector<8x128xf32>
    %292 = vector.broadcast %273 : vector<1x128xf32> to vector<8x128xf32>
    %293 = arith.addf %291, %292 : vector<8x128xf32>
    %294 = arith.truncf %293 : vector<8x128xf32> to vector<8x128xbf16>
    %c0_109 = arith.constant 0 : index
    %c0_110 = arith.constant 0 : index
    %295 = vector.load %arg25[%c0_109, %c0_110] : memref<8x128xbf16, #tpu.memory_space<vmem>>, vector<8x128xbf16>
    tpu.vector_store %arg25[%c0_109, %c0_110], %294 {strides = array<i32>} : memref<8x128xbf16, #tpu.memory_space<vmem>>, vector<8x128xbf16>,
    return
  }
  func.func @transform_0(%arg0: i32) -> (i32, i32) {
    %c0_i32 = arith.constant 0 : i32
    %c0_i32_0 = arith.constant 0 : i32
    return %arg0, %c0_i32 : i32, i32
  }
  func.func @transform_1(%arg0: i32) -> (i32, i32) {
    %c0_i32 = arith.constant 0 : i32
    %c0_i32_0 = arith.constant 0 : i32
    return %arg0, %c0_i32 : i32, i32
  }
  func.func @transform_2(%arg0: i32) -> (i32, i32, i32) {
    %c0_i32 = arith.constant 0 : i32
    %c0_i32_0 = arith.constant 0 : i32
    %c0_i32_1 = arith.constant 0 : i32
    return %arg0, %c0_i32, %c0_i32_0 : i32, i32, i32
  }
  func.func @transform_3(%arg0: i32) -> (i32, i32, i32) {
    %c0_i32 = arith.constant 0 : i32
    %c0_i32_0 = arith.constant 0 : i32
    %c0_i32_1 = arith.constant 0 : i32
    return %arg0, %c0_i32, %c0_i32_0 : i32, i32, i32
  }
  func.func @transform_4(%arg0: i32) -> (i32, i32) {
    %c0_i32 = arith.constant 0 : i32
    %c0_i32_0 = arith.constant 0 : i32
    %c0_i32_1 = arith.constant 0 : i32
    return %c0_i32, %c0_i32_0 : i32, i32
  }
  func.func @transform_5(%arg0: i32) -> (i32, i32) {
    %c0_i32 = arith.constant 0 : i32
    %c0_i32_0 = arith.constant 0 : i32
    %c0_i32_1 = arith.constant 0 : i32
    return %c0_i32, %c0_i32_0 : i32, i32
  }
  func.func @transform_6(%arg0: i32) -> (i32, i32) {
    %c0_i32 = arith.constant 0 : i32
    %c0_i32_0 = arith.constant 0 : i32
    %c0_i32_1 = arith.constant 0 : i32
    return %c0_i32, %c0_i32_0 : i32, i32
  }
  func.func @transform_7(%arg0: i32) -> (i32, i32) {
    %c0_i32 = arith.constant 0 : i32
    %c0_i32_0 = arith.constant 0 : i32
    %c0_i32_1 = arith.constant 0 : i32
    return %c0_i32, %c0_i32_0 : i32, i32
  }
  func.func @transform_8(%arg0: i32) -> (i32, i32) {
    %c0_i32 = arith.constant 0 : i32
    %c0_i32_0 = arith.constant 0 : i32
    %c0_i32_1 = arith.constant 0 : i32
    return %c0_i32, %c0_i32_0 : i32, i32
  }
  func.func @transform_9(%arg0: i32) -> (i32, i32) {
    %c0_i32 = arith.constant 0 : i32
    %c0_i32_0 = arith.constant 0 : i32
    %c0_i32_1 = arith.constant 0 : i32
    return %c0_i32, %c0_i32_0 : i32, i32
  }
  func.func @transform_10(%arg0: i32) -> (i32, i32) {
    %c0_i32 = arith.constant 0 : i32
    %c0_i32_0 = arith.constant 0 : i32
    %c0_i32_1 = arith.constant 0 : i32
    return %c0_i32, %c0_i32_0 : i32, i32
  }
  func.func @transform_11(%arg0: i32) -> (i32, i32) {
    %c0_i32 = arith.constant 0 : i32
    %c0_i32_0 = arith.constant 0 : i32
    %c0_i32_1 = arith.constant 0 : i32
    return %c0_i32, %c0_i32_0 : i32, i32
  }
  func.func @transform_12(%arg0: i32) -> (i32, i32) {
    %c0_i32 = arith.constant 0 : i32
    %c0_i32_0 = arith.constant 0 : i32
    %c0_i32_1 = arith.constant 0 : i32
    return %c0_i32, %c0_i32_0 : i32, i32
  }
  func.func @transform_13(%arg0: i32) -> (i32, i32) {
    %c0_i32 = arith.constant 0 : i32
    %c0_i32_0 = arith.constant 0 : i32
    %c0_i32_1 = arith.constant 0 : i32
    return %c0_i32, %c0_i32_0 : i32, i32
  }
  func.func @transform_14(%arg0: i32) -> (i32, i32) {
    %c0_i32 = arith.constant 0 : i32
    %c0_i32_0 = arith.constant 0 : i32
    %c0_i32_1 = arith.constant 0 : i32
    return %c0_i32, %c0_i32_0 : i32, i32
  }
  func.func @transform_15(%arg0: i32) -> (i32, i32) {
    %c0_i32 = arith.constant 0 : i32
    %c0_i32_0 = arith.constant 0 : i32
    %c0_i32_1 = arith.constant 0 : i32
    return %c0_i32, %c0_i32_0 : i32, i32
  }
  func.func @transform_16(%arg0: i32) -> (i32, i32) {
    %c0_i32 = arith.constant 0 : i32
    %c0_i32_0 = arith.constant 0 : i32
    %c0_i32_1 = arith.constant 0 : i32
    return %c0_i32, %c0_i32_0 : i32, i32
  }
  func.func @transform_17(%arg0: i32) -> (i32, i32) {
    %c0_i32 = arith.constant 0 : i32
    %c0_i32_0 = arith.constant 0 : i32
    %c0_i32_1 = arith.constant 0 : i32
    return %c0_i32, %c0_i32_0 : i32, i32
  }
  func.func @transform_18(%arg0: i32) -> (i32, i32) {
    %c0_i32 = arith.constant 0 : i32
    %c0_i32_0 = arith.constant 0 : i32
    %c0_i32_1 = arith.constant 0 : i32
    return %c0_i32, %c0_i32_0 : i32, i32
  }
  func.func @transform_19(%arg0: i32) -> (i32, i32) {
    %c0_i32 = arith.constant 0 : i32
    %c0_i32_0 = arith.constant 0 : i32
    %c0_i32_1 = arith.constant 0 : i32
    return %c0_i32, %c0_i32_0 : i32, i32
  }
  func.func @transform_20(%arg0: i32) -> (i32, i32) {
    %c0_i32 = arith.constant 0 : i32
    %c0_i32_0 = arith.constant 0 : i32
    %c0_i32_1 = arith.constant 0 : i32
    return %c0_i32, %c0_i32_0 : i32, i32
  }
  func.func @transform_21(%arg0: i32) -> (i32, i32) {
    %c0_i32 = arith.constant 0 : i32
    %c0_i32_0 = arith.constant 0 : i32
    %c0_i32_1 = arith.constant 0 : i32
    return %c0_i32, %c0_i32_0 : i32, i32
  }
  func.func @transform_22(%arg0: i32) -> (i32, i32) {
    %c0_i32 = arith.constant 0 : i32
    %c0_i32_0 = arith.constant 0 : i32
    %c0_i32_1 = arith.constant 0 : i32
    return %c0_i32, %c0_i32_0 : i32, i32
  }
  func.func @transform_23(%arg0: i32) -> (i32, i32) {
    %c0_i32 = arith.constant 0 : i32
    %c0_i32_0 = arith.constant 0 : i32
    %c0_i32_1 = arith.constant 0 : i32
    return %c0_i32, %c0_i32_0 : i32, i32
  }
  func.func @transform_24(%arg0: i32) -> (i32, i32) {
    %c0_i32 = arith.constant 0 : i32
    %c0_i32_0 = arith.constant 0 : i32
    return %arg0, %c0_i32 : i32, i32
  }
}

</mosaic_0001>

<bundles_post_ra>
// kernel: tpu_custom_call.1
= control target key start
LH: loop header
LB: loop body
LE: loop exit
PB: predicated region body
PF: predicated region fallthrough
CT: control target
= control target key end

     0   :  { %s5084_s0 = inlined_call_operand.hbm [shape: f32[16,128], index: 0, kind: input, shape index: {}]   ;;  %s5085_s1 = inlined_call_operand.hbm [shape: f32[16,128], index: 1, kind: input, shape index: {}]   ;;  %s5086_s2 = inlined_call_operand.hbm [shape: f32[2,1,8], index: 2, kind: input, shape index: {}]   ;;  %s5087_s3 = inlined_call_operand.hbm [shape: f32[2,1,8], index: 3, kind: input, shape index: {}]   ;;  %s5088_s4 = inlined_call_operand.hbm [shape: bf16[128,384], index: 4, kind: input, shape index: {}]   ;;  %s5089_s5 = inlined_call_operand.vmem [shape: f32[1,384], index: 5, kind: input, shape index: {}]   ;;  %s5090_s6 = inlined_call_operand.hbm [shape: bf16[128,128], index: 6, kind: input, shape index: {}]   ;;  %s5091_s7 = inlined_call_operand.hbm [shape: f32[1,128], index: 7, kind: input, shape index: {}]   ;;  %s5092_s8 = inlined_call_operand.hbm [shape: f32[1,128], index: 8, kind: input, shape index: {}]   ;;  %s5093_s9 = inlined_call_operand.hbm [shape: f32[1,128], index: 9, kind: input, shape index: {}]   ;;  %s5094_s10 = inlined_call_operand.hbm [shape: bf16[128,128], index: 10, kind: input, shape index: {}]   ;;  %s5095_s11 = inlined_call_operand.vmem [shape: f32[1,128], index: 11, kind: input, shape index: {}]   ;;  %s5096_s12 = inlined_call_operand.hbm [shape: bf16[128,256], index: 12, kind: input, shape index: {}]   ;;  %s5097_s13 = inlined_call_operand.vmem [shape: f32[1,256], index: 13, kind: input, shape index: {}]   ;;  %s5098_s14 = inlined_call_operand.hbm [shape: bf16[128,128], index: 14, kind: input, shape index: {}]   ;;  %s5099_s15 = inlined_call_operand.vmem [shape: f32[1,128], index: 15, kind: input, shape index: {}]   ;;  %s5100_s16 = inlined_call_operand.vmem [shape: f32[1,128], index: 16, kind: input, shape index: {}]   ;;  %s5101_s17 = inlined_call_operand.vmem [shape: f32[1,128], index: 17, kind: input, shape index: {}]   ;;  %s5102_s18 = inlined_call_operand.hbm [shape: bf16[128,512], index: 18, kind: input, shape index: {}]   ;;  %s5103_s19 = inlined_call_operand.vmem [shape: f32[1,512], index: 19, kind: input, shape index: {}]   ;;  %s5104_s20 = inlined_call_operand.hbm [shape: bf16[512,128], index: 20, kind: input, shape index: {}]   ;;  %s5105_s21 = inlined_call_operand.vmem [shape: f32[1,128], index: 21, kind: input, shape index: {}]   ;;  %s5106_s22 = inlined_call_operand.vmem [shape: f32[1,128], index: 22, kind: input, shape index: {}]   ;;  %s5107_s23 = inlined_call_operand.vmem [shape: f32[1,128], index: 23, kind: input, shape index: {}]   ;;  %s5108_s24 = inlined_call_operand.hbm [shape: bf16[16,128], index: 24, kind: output, shape index: {}]  }
   0x1   :  { %5128 = sst [smem:[#allocation42_spill]] %s5084_s0 }
   0x2   :  { %5129 = sst [smem:[#allocation43_spill]] %s5085_s1 }
   0x3   :  { %5130 = sst [smem:[#allocation44_spill]] %s5086_s2 }
   0x4   :  { %5131 = sst [smem:[#allocation45_spill]] %s5087_s3 }
   0x5   :  { %5132 = sst [smem:[#allocation46_spill]] %s5088_s4 }
   0x6   :  { %5133 = sst [smem:[#allocation47_spill]] %s5089_s5 }
   0x7   :  { %5134 = sst [smem:[#allocation48_spill]] %s5090_s6 }
   0x8   :  { %5135 = sst [smem:[#allocation49_spill]] %s5091_s7 }
   0x9   :  { %5136 = sst [smem:[#allocation50_spill]] %s5092_s8 }
   0xa   :  { %5137 = sst [smem:[#allocation51_spill]] %s5093_s9 }
   0xb   :  { %5138 = sst [smem:[#allocation52_spill]] %s5094_s10 }
   0xc   :  { %5139 = sst [smem:[#allocation53_spill]] %s5096_s12 }
   0xd   :  { %5140 = sst [smem:[#allocation54_spill]] %s5098_s14 }
   0xe   :  { %5141 = sst [smem:[#allocation55_spill]] %s5101_s17 }
   0xf   :  { %5142 = sst [smem:[#allocation56_spill]] %s5103_s19 }
  0x10   :  { %5143 = sst [smem:[#allocation57_spill]] %s5105_s21 }
  0x11   :  { %5144 = sst [smem:[#allocation58_spill]] %s5106_s22 }
  0x12   :  { %5145 = sst [smem:[#allocation59_spill]] %s5107_s23 }
  0x13   :  { %5146 = sst [smem:[#allocation60_spill]] %s5108_s24 }
  0x14   :  { %29 = vsyncpa [#allocation3], 0 }
  0x15   :  { %31 = vsyncpa [#allocation3 + $0x1], 0 }
  0x16   :  { %32 = vsyncpa [#allocation6], 0 }
  0x17   :  { %34 = vsyncpa [#allocation6 + $0x1], 0 }
  0x18   :  { %35 = vsyncpa [#allocation9], 0 }
  0x19   :  { %37 = vsyncpa [#allocation9 + $0x1], 0 }
  0x1a   :  { %38 = vsyncpa [#allocation12], 0 }
  0x1b   :  { %39 = vsyncpa [#allocation15], 0 }
  0x1c   :  { %40 = vsyncpa [#allocation18], 0 }
  0x1d   :  { %41 = vsyncpa [#allocation21], 0 }
  0x1e   :  { %42 = vsyncpa [#allocation24], 0 }
  0x1f   :  { %43 = vsyncpa [#allocation4], 0 }
  0x20   :  { %45 = vsyncpa [#allocation4 + $0x1], 0  ;;  %s4622_s5 = smov 0   ;;  %s4624_s26 = smov 0  }
  0x21   :  { %s4626_s27 = smov 0   ;;  %s4628_s28 = smov 0  }
  0x22 LB: > { %5147 = sst [smem:[#allocation36_spill]] %s4459_s5  ;;  %s4646_s7 = sadd.s32 4294967295, %s4471_s28   ;;  %s4471_s28 = sphi %s4628_s28, %s5199_s28   ;;  %s4467_s27 = sphi %s4626_s27, %s5201_s27   ;;  %s4463_s26 = sphi %s4624_s26, %s5203_s26   ;;  %s4459_s5 = sphi %s4622_s5, %s5202_s5  }
  0x23   : > { %5148 = sst [smem:[#allocation37_spill]] %s4467_s27  ;;  %p3036_p0 = scmp.ge.s32.totalorder %s4471_s28, 1 }
  0x24   : > { %s5149_s29 = sld [smem:[#allocation46_spill]]  ;;  %p5121_p1 = scmp.eq.s32.totalorder %s4646_s7, 0 }
  0x25   : > { %p606_p2 = scmp.lt.s32.totalorder %s4471_s28, 3  ;;  %s4473_s3 = smov [#allocation10]  }
  0x26   : > { %s619_s25 = sshll.u32 %s4473_s3, 4  ;;  %s5151_s1 = sld [smem:[#allocation48_spill]]  ;;  %s620_s25 = int_to_ptr.vmem [resolvable:$true] %s619_s25 }
  0x27   : > { %p4651_p3 = pnand %p3036_p0, %p606_p2  ;;  %s4475_s3 = smov 192  }
  0x28   : > { %s4476_s23 = smov 12   ;;  %s5114_s22 = smov 64  }
  0x29   : > { %p3776_p4 = pneg %p4651_p3  ;;  %s5115_s8 = smov 4  }
  0x2a   : > { %s617_s0 = sshll.u32 %s5149_s29, 4  ;;  %s4474_s29 = smov [#allocation11]   ;;  %s618_s0 = int_to_ptr.hbm [resolvable:$true] %s617_s0 }
  0x2b   : > { %p4663_p6 = pnand %p3776_p4, %p5121_p1  ;;  %s636_s24 = sshll.u32 %s4474_s29, 4  ;;  %s637_s24 = int_to_ptr.vmem [resolvable:$true] %s636_s24 }
  0x2c   : > { %s634_s6 = sshll.u32 %s5151_s1, 4  ;;  %s5153_s21 = sld [smem:[#allocation50_spill]]  ;;  %s635_s6 = int_to_ptr.hbm [resolvable:$true] %s634_s6 }
  0x2d   : > { %3779 = dma.hbm_to_vmem [thread:$0]  (!%p4663_p6), %s618_s0, 3072, %s620_s25, [#allocation9], %s4475_s3, %s4475_s3, %s4476_s23  }
  0x2e   : > { %3782 = dma.hbm_to_vmem [thread:$0]  (!%p4663_p6), %s635_s6, 1024, %s637_s24, [#allocation12], %s5114_s22, %s5114_s22, %s5115_s8  }
  0x2f   : > { %s4479_s29 = smov [#allocation14]   ;;  %s5154_s10 = sld [smem:[#allocation52_spill]] }
  0x30   : > { %s663_s17 = sshll.u32 %s4479_s29, 4  ;;  %s4480_s24 = smov [#allocation17]   ;;  %s664_s17 = int_to_ptr.vmem [resolvable:$true] %s663_s17 }
  0x31   : > { %s5155_s14 = sld [smem:[#allocation54_spill]]  ;;  %s3035_s1 = sadd.s32 4294967294, %s4471_s28  }
  0x32   : > { %s661_s19 = sshll.u32 %s5153_s21, 4  ;;  %s686_s21 = sshll.u32 %s4480_s24, 4  ;;  %s662_s19 = int_to_ptr.hbm [resolvable:$true] %s661_s19  ;;  %s687_s21 = int_to_ptr.vmem [resolvable:$true] %s686_s21 }
  0x33   : > { %3788 = dma.hbm_to_vmem [thread:$0]  (!%p4663_p6), %s662_s19, 16, %s664_s17, [#allocation15]  }
  0x34   : > { %s4481_s17 = smov [#allocation20]   ;;  %s4697_s29 = sadd.s32 1, %s4471_s28  }
  0x35   : > { %s684_s25 = sshll.u32 %s5154_s10, 4  ;;  %s720_s19 = sshll.u32 %s4481_s17, 4  ;;  %s685_s25 = int_to_ptr.hbm [resolvable:$true] %s684_s25  ;;  %s721_s19 = int_to_ptr.vmem [resolvable:$true] %s720_s19 }
  0x36   : > { %3794 = dma.hbm_to_vmem [thread:$0]  (!%p4663_p6), %s685_s25, 1024, %s687_s21, [#allocation18], %s5114_s22, %s5114_s22, %s5115_s8  }
  0x37   : > { %s718_s4 = sshll.u32 %s5155_s14, 4  ;;  %5156 = sst [smem:[#allocation38_spill]] %s4697_s29  ;;  %s719_s4 = int_to_ptr.hbm [resolvable:$true] %s718_s4 }
  0x38   : > { %3800 = dma.hbm_to_vmem [thread:$0]  (!%p4663_p6), %s719_s4, 1024, %s721_s19, [#allocation21], %s5114_s22, %s5114_s22, %s5115_s8  }
  0x39   : > { %s58_s23 = sadd.s32 1, %s4467_s27  ;;  %s55_s0 = ssub.s32 %s4471_s28, %s4697_s29 }
  0x3a   : > { %p65_p7 = scmp.ne.s32.totalorder %s4467_s27, %s4463_s26  ;;  %p56_p8 = scmp.eq.s32.totalorder %s55_s0, 0 }
  0x3b   : > { %p66_p9 = scmp.eq.s32.totalorder %s4471_s28, 0  ;;  %p71_p10 = scmp.ne.s32.totalorder %s4463_s26, %s4459_s5 }
  0x3c   : > { %p593_p11 = scmp.eq.s32.totalorder %s4646_s7, 1  ;;  %p599_p2 = scmp.eq.s32.totalorder %s3035_s1, 1 }
  0x3d   : > { %s4709_s25 = scalar_select %p56_p8, %s4467_s27, %s58_s23  }
  0x3e   : > { %p67_p12 = por %p66_p9, %p65_p7  ;;  %p4713_p13 = por %p5121_p1, %p71_p10 }
  0x3f   : > { %5157 = sst [smem:[#allocation39_spill]] %s4709_s25  ;;  %p4717_p0 = por %p593_p11, %p65_p7 }
  0x40   : > { %p3834_p4 = scmp.lt.s32.totalorder %s4471_s28, 2  ;;  %s4723_s6 = sand.u32 1, %s4467_s27  }
  0x41   : > { %s5159_s21 = scalar_select %p4717_p0, 1, 0 }
  0x42   : > { %p4725_p5 = por %p599_p2, %p71_p10  ;;  %s5120_s4 = sshll.u32 %s4723_s6, 3 }
  0x43   : > { %5160 = sst [smem:[#allocation40_spill]] %s5159_s21  ;;  %s5123_s17 = sshll.u32 %s4471_s28, 3 }
  0x44   : > { %s5161_s3 = scalar_select %p4725_p5, 1, 0 }
  0x45   : > { %p4731_p8 = pnand %p3834_p4, %p67_p12  ;;  %s5122_s23 = sand.u32 1, %s4471_s28  }
  0x46   : > { %5162 = sst [smem:[#allocation41_spill]] %s5161_s3  ;;  %s806_s10 = scalar_lea.vmem [#allocation5], %s5120_s4 }
  0x47   : > { %s5164_s22 = sld [smem:[#allocation43_spill]]  ;;  %s814_s14 = sshll.u32 %s806_s10, 4  ;;  %s815_s14 = int_to_ptr.vmem [resolvable:$true] %s814_s14 }
  0x48   : > { %s4745_s27 = scalar_lea.sflag [#allocation6], %s5122_s23  ;;  %p4107_p9 = pneg %p4731_p8 }
  0x4d   : > { %s810_s8 = scalar_lea.hbm %s5164_s22, %s5123_s17  ;;  %s4110_s10 = scalar_lea.hbm %s5164_s22, 16 }
  0x4e   : > { %s812_s25 = sshll.u32 %s810_s8, 4  ;;  %s813_s25 = int_to_ptr.hbm [resolvable:$true] %s812_s25 }
  0x4f   : > { %s4103_s29 = sshra.s32 %s813_s25, 4  ;;  %s4104_s29 = int_to_ptr.hbm [resolvable:$true] %s4103_s29 }
  0x50   : > { %s4105_s3 = scalar_lea.hbm %s4104_s29, 8  ;;  %p4111_p12 = scmp.lt.s32.totalorder %s4104_s29, %s5164_s22 }
  0x51   : > { %p4106_p7 = scmp.ne.s32.totalorder %s4104_s29, %s4105_s3  ;;  %p4112_p2 = scmp.lt.s32.totalorder %s4110_s10, %s4105_s3 }
  0x53   : > { %p4108_p10 = pnand %p4107_p9, %p4106_p7  ;;  %p4113_p4 = por %p4112_p2, %p4111_p12 }
  0x55   : > { %p4109_p11 = pneg %p4108_p10 }
  0x57   : > { %p4114_p1 = pnand %p4113_p4, %p4109_p11 }
  0x59   : > { %4117 = shalt.err (!%p4114_p1)
}
  0x5a   : > { %3813 = dma.hbm_to_vmem [thread:$0]  (!%p4731_p8), %s813_s25, 128, %s815_s14, %s4745_s27  }
  0x5b   : > { %s5165_s5 = sld [smem:[#allocation49_spill]]  ;;  %s4482_s1 = smov [#allocation13]  }
  0x5c   : > { %s651_s0 = sshll.u32 %s4482_s1, 4  ;;  %s5166_s9 = sld [smem:[#allocation51_spill]]  ;;  %s652_s0 = int_to_ptr.vmem [resolvable:$true] %s651_s0 }
  0x5d   : > { %s4483_s10 = smov [#allocation16]   ;;  %s5167_s12 = sld [smem:[#allocation53_spill]] }
  0x5e   : > { %s675_s8 = sshll.u32 %s4483_s10, 4  ;;  %s741_s4 = sshll.u32 %s5102_s18, 4  ;;  %s676_s8 = int_to_ptr.vmem [resolvable:$true] %s675_s8  ;;  %s742_s4 = int_to_ptr.hbm [resolvable:$true] %s741_s4 }
  0x5f   : > { %s4487_s22 = smov [#allocation22]   ;;  %s4489_s10 = smov 16  }
  0x60   : > { %s743_s29 = sshll.u32 %s4487_s22, 4  ;;  %s4490_s23 = smov [#allocation23]   ;;  %s744_s29 = int_to_ptr.vmem [resolvable:$true] %s743_s29 }
  0x61   : > { %s649_s21 = sshll.u32 %s5165_s5, 4  ;;  %s4484_s5 = smov [#allocation19]   ;;  %s650_s21 = int_to_ptr.hbm [resolvable:$true] %s649_s21 }
  0x62   : > { %s673_s3 = sshll.u32 %s5166_s9, 4  ;;  %s703_s17 = sshll.u32 %s4484_s5, 4  ;;  %s674_s3 = int_to_ptr.hbm [resolvable:$true] %s673_s3  ;;  %s704_s17 = int_to_ptr.vmem [resolvable:$true] %s703_s17 }
  0x63   : > { %3785 = dma.hbm_to_vmem [thread:$0]  (!%p4663_p6), %s650_s21, 16, %s652_s0, [#allocation12]  }
  0x64   : > { %s701_s25 = sshll.u32 %s5167_s12, 4  ;;  %s4485_s21 = smov 128   ;;  %s702_s25 = int_to_ptr.hbm [resolvable:$true] %s701_s25 }
  0x65   : > { %3791 = dma.hbm_to_vmem [thread:$0]  (!%p4663_p6), %s674_s3, 16, %s676_s8, [#allocation15]  }
  0x66   : > { %s4486_s0 = smov 8   ;;  %s4488_s3 = smov 256  }
  0x67   : > { %3797 = dma.hbm_to_vmem [thread:$0]  (!%p4663_p6), %s702_s25, 2048, %s704_s17, [#allocation18], %s4485_s21, %s4485_s21, %s4486_s0  }
  0x68   : > { %3803 = dma.hbm_to_vmem [thread:$0]  (!%p4663_p6), %s742_s4, 4096, %s744_s29, [#allocation21], %s4488_s3, %s4488_s3, %s4489_s10  }
  0x69   : > { %s758_s5 = sshll.u32 %s5104_s20, 4  ;;  %s760_s1 = sshll.u32 %s4490_s23, 4  ;;  %s759_s5 = int_to_ptr.hbm [resolvable:$true] %s758_s5  ;;  %s761_s1 = int_to_ptr.vmem [resolvable:$true] %s760_s1 }
  0x6a   : > { %s5168_s25 = smov 4   ;;  %s5169_s17 = smov 64  }
  0x6b   : > { %3806 = dma.hbm_to_vmem [thread:$0]  (!%p4663_p6), %s759_s5, 4096, %s761_s1, [#allocation24], %s5169_s17, %s5169_s17, %s5168_s25  }
  0x6c   : > { %s5170_s21 = sshll.u32 %s4471_s28, 3  ;;  %s5171_s9 = sld [smem:[#allocation42_spill]] }
  0x6d   : > { %s5172_s29 = sshll.u32 %s4723_s6, 3  ;;  %s784_s8 = scalar_lea.sflag [#allocation3], %s4723_s6 }
  0x6e   : > { %s787_s3 = scalar_lea.vmem [#allocation2], %s5172_s29 }
  0x6f   : > { %s795_s10 = sshll.u32 %s787_s3, 4  ;;  %s796_s10 = int_to_ptr.vmem [resolvable:$true] %s795_s10 }
  0x72   : > { %s791_s12 = scalar_lea.hbm %s5171_s9, %s5170_s21  ;;  %s4290_s1 = scalar_lea.hbm %s5171_s9, 16 }
  0x73   : > { %s793_s4 = sshll.u32 %s791_s12, 4  ;;  %s794_s4 = int_to_ptr.hbm [resolvable:$true] %s793_s4 }
  0x74   : > { %s4283_s14 = sshra.s32 %s794_s4, 4  ;;  %s4284_s14 = int_to_ptr.hbm [resolvable:$true] %s4283_s14 }
  0x75   : > { %s4285_s23 = scalar_lea.hbm %s4284_s14, 8  ;;  %p4291_p10 = scmp.lt.s32.totalorder %s4284_s14, %s5171_s9 }
  0x76   : > { %p4286_p1 = scmp.ne.s32.totalorder %s4284_s14, %s4285_s23  ;;  %p4292_p11 = scmp.lt.s32.totalorder %s4290_s1, %s4285_s23 }
  0x78   : > { %p4288_p7 = pnand %p4286_p1, %p4107_p9  ;;  %p4293_p12 = por %p4292_p11, %p4291_p10 }
  0x7a   : > { %p4289_p6 = pneg %p4288_p7 }
  0x7c   : > { %p4294_p2 = pnand %p4293_p12, %p4289_p6 }
  0x7e   : > { %4297 = shalt.err (!%p4294_p2)
}
  0x7f   : > { %3810 = dma.hbm_to_vmem [thread:$0]  (!%p4731_p8), %s794_s4, 128, %s796_s10, %s784_s8  }
  0x80   : > { %s5173_s0 = sld [smem:[#allocation44_spill]]  ;;  %s824_s3 = scalar_lea.vmem [#allocation7], %s4723_s6 }
  0x81   : > { %s831_s2 = sshll.u32 %s824_s3, 4  ;;  %s832_s2 = int_to_ptr.vmem [resolvable:$true] %s831_s2 }
  0x86   : > { %s827_s22 = scalar_lea.hbm %s5173_s0, %s4471_s28  ;;  %s4320_s4 = scalar_lea.hbm %s5173_s0, 2 }
  0x87   : > { %s829_s29 = sshll.u32 %s827_s22, 4  ;;  %s830_s29 = int_to_ptr.hbm [resolvable:$true] %s829_s29 }
  0x88   : > { %s4313_s14 = sshra.s32 %s830_s29, 4  ;;  %s4314_s14 = int_to_ptr.hbm [resolvable:$true] %s4313_s14 }
  0x89   : > { %s4315_s23 = scalar_lea.hbm %s4314_s14, 1  ;;  %p4321_p6 = scmp.lt.s32.totalorder %s4314_s14, %s5173_s0 }
  0x8a   : > { %p4316_p4 = scmp.ne.s32.totalorder %s4314_s14, %s4315_s23  ;;  %p4322_p10 = scmp.lt.s32.totalorder %s4320_s4, %s4315_s23 }
  0x8c   : > { %p4318_p1 = pnand %p4316_p4, %p4107_p9  ;;  %p4323_p11 = por %p4322_p10, %p4321_p6 }
  0x8e   : > { %p4319_p7 = pneg %p4318_p1 }
  0x90   : > { %p4324_p12 = pnand %p4323_p11, %p4319_p7 }
  0x92   : > { %4327 = shalt.err (!%p4324_p12)
}
  0x93   : > { %3816 = dma.hbm_to_vmem [thread:$0]  (!%p4731_p8), %s830_s29, 16, %s832_s2, %s4745_s27  }
  0x94   : > { %s5174_s17 = sld [smem:[#allocation45_spill]]  ;;  %s841_s3 = scalar_lea.vmem [#allocation8], %s4723_s6 }
  0x95   : > { %s848_s5 = sshll.u32 %s841_s3, 4  ;;  %s5175_s14 = sand.u32 1, %s4471_s28   ;;  %s849_s5 = int_to_ptr.vmem [resolvable:$true] %s848_s5 }
  0x96   : > { %s839_s23 = scalar_lea.sflag [#allocation9], %s5175_s14 }
  0x9a   : > { %s844_s21 = scalar_lea.hbm %s5174_s17, %s4471_s28  ;;  %s4350_s2 = scalar_lea.hbm %s5174_s17, 2 }
  0x9b   : > { %s846_s22 = sshll.u32 %s844_s21, 4  ;;  %s847_s22 = int_to_ptr.hbm [resolvable:$true] %s846_s22 }
  0x9c   : > { %s4343_s1 = sshra.s32 %s847_s22, 4  ;;  %s4344_s1 = int_to_ptr.hbm [resolvable:$true] %s4343_s1 }
  0x9d   : > { %s4345_s4 = scalar_lea.hbm %s4344_s1, 1  ;;  %p4351_p7 = scmp.lt.s32.totalorder %s4344_s1, %s5174_s17 }
  0x9e   : > { %p4346_p2 = scmp.ne.s32.totalorder %s4344_s1, %s4345_s4  ;;  %p4352_p6 = scmp.lt.s32.totalorder %s4350_s2, %s4345_s4 }
  0xa0   : > { %p4348_p4 = pnand %p4346_p2, %p4107_p9  ;;  %p4353_p10 = por %p4352_p6, %p4351_p7 }
  0xa2   : > { %p4349_p1 = pneg %p4348_p4 }
  0xa4   : > { %p4354_p11 = pnand %p4353_p10, %p4349_p1 }
  0xa6   : > { %4357 = shalt.err (!%p4354_p11)
}
  0xa7   : > { %3819 = dma.hbm_to_vmem [thread:$0]  (!%p4731_p8), %s847_s22, 16, %s849_s5, %s839_s23  }
  0xa8   : > { %857 = sbr.rel (%p4651_p3) target bundleno = 3720 (0xe88), region = 116  ;;  %s4846_s6 = sand.u32 (!%p4651_p3), 1, %s4463_s26  }
  0xa9   : > { %s3053_s25 = sshll.u32 (!%p4651_p3), %s4846_s6, 3  ;;  %s860_s12 = scalar_lea.sflag (!%p4651_p3), [#allocation3], %s4846_s6 }
  0xaa   : > { %s4850_s21 = scalar_lea.vmem (!%p4651_p3), [#allocation2], %s3053_s25 }
  0xad   : > { %4418 = dma.done.wait (%p4713_p13), %s860_s12, 128  }
  0xae   : > { %4420 = vsyncadd (%p4713_p13), %s860_s12, 4294967168  ;;  %s869_s19 = sand.u32 1, %s4646_s7   ;;  %s4857_s22 = scalar_lea.vmem [#allocation5], %s3053_s25 }
  0xaf   : > { %s870_s30 = scalar_lea.sflag [#allocation6], %s869_s19 }
  0xb0   : > { %4422 = dma.done.wait (%p4713_p13), %s870_s30, 144  }
  0xb1   : > { %4424 = vsyncadd (%p4713_p13), %s870_s30, 4294967152  ;;  %s882_s3 = scalar_lea.vmem [#allocation7], %s4846_s6  ;;  %s889_s5 = scalar_lea.sflag [#allocation9], %s869_s19 }
  0xb2   : > { %s891_s14 = scalar_lea.vmem [#allocation8], %s4846_s6 }
  0xb3   : > { %4426 = dma.done.wait (%p4713_p13), %s889_s5, 16  }
  0xb4   : > { %4428 = vsyncadd (%p4713_p13), %s889_s5, 4294967280  ;;  %p5176_p3 = scmp.eq.s32.totalorder %s4646_s7, 0 }
  0xb6   : > { %4430 = dma.done.wait (%p5176_p3), [#allocation9], 3072   ;;  %p5177_p8 = pmov %p5176_p3 }
  0xb7   : > { %p5178_p9 = pmov %p5176_p3 }
  0xb8   : > { %4432 = vsyncadd (%p5177_p8), [#allocation9], 4294964224 }
  0xb9   : > { %4434 = dma.done.wait (%p5178_p9), [#allocation12], 1040   ;;  %p5179_p12 = pmov %p5176_p3 }
  0xba   : > { %p5180_p2 = pmov %p5176_p3 }
  0xbb   : > { %4436 = vsyncadd (%p5179_p12), [#allocation12], 4294966256 }
  0xbc   : > { %4438 = dma.done.wait (%p5180_p2), [#allocation15], 32   ;;  %p5181_p4 = pmov %p5180_p2 }
  0xbd   : > { %p5182_p13 = pmov %p5180_p2 }
  0xbe   : > { %4440 = vsyncadd (%p5181_p4), [#allocation15], 4294967264 }
  0xbf   : > { %4442 = dma.done.wait (%p5182_p13), [#allocation18], 3072   ;;  %p5183_p1 = pmov %p5180_p2 }
  0xc1   : > { %4444 = vsyncadd (%p5183_p1), [#allocation18], 4294964224  ;;  %p5184_p7 = pmov %p5183_p1 }
  0xc2   : > { %p5185_p6 = pmov %p5183_p1 }
  0xc3   : > { %4446 = dma.done.wait (%p5184_p7), [#allocation21], 5120  }
  0xc4   : > { %4448 = vsyncadd (%p5185_p6), [#allocation21], 4294962176  ;;  %p5186_p10 = pmov %p5183_p1 }
  0xc5   : > { %p5187_p11 = pmov %p5183_p1 }
  0xc6   : > { %4450 = dma.done.wait (%p5186_p10), [#allocation24], 4096  }
  0xc7   : > { %4452 = vsyncadd (%p5187_p11), [#allocation24], 4294963200  ;;  %v3152_v0 = vld [vmem:[#allocation10 + $0xa8] sm:$0xf]  ;;  %v3620_v1 = vld [vmem:[#allocation10 + $0xb0] sm:$0xf0] }
  0xc8   : > { %v3619_v2 = vld [vmem:[#allocation10 + $0xac] sm:$0xf]  ;;  %v3153_v3 = vor.u32 %v3620_v1, %v3152_v0  ;;  %v3154_v4 = vld [vmem:[#allocation10 + $0xb4] sm:$0xf0]  ;;  %v3140_v5 = vld [vmem:[#allocation10 + $0x90] sm:$0xf] }
  0xc9   : > { %v3617_v6 = vld [vmem:[#allocation10 + $0x98] sm:$0xf0]  ;;  %v3157_v7 = vor.u32 %v3619_v2, %v3154_v4  ;;  %v3616_v8 = vld [vmem:[#allocation10 + $0x94] sm:$0xf]  ;;  %v3142_v9 = vld [vmem:[#allocation10 + $0x9c] sm:$0xf0] }
  0xca   : > { %1206 = vmatpush.bf16.msra.mxu0 %v3153_v3  ;;  %v3141_v10 = vor.u32 %v3617_v6, %v3140_v5  ;;  %v3145_v11 = vor.u32 %v3616_v8, %v3142_v9  ;;  %v3128_v12 = vld [vmem:[#allocation10 + $0x78] sm:$0xf]  ;;  %v3614_v13 = vld [vmem:[#allocation10 + $0x80] sm:$0xf0]  ;;  %v3613_v14 = vld [vmem:[#allocation10 + $0x7c] sm:$0xf] }
  0xcb   : > { %1219 = vmatpush.bf16.msra.mxu1 %v3157_v7  ;;  %v3130_v15 = vld [vmem:[#allocation10 + $0x84] sm:$0xf0]  ;;  %v3129_v16 = vor.u32 %v3614_v13, %v3128_v12  ;;  %v3116_v18 = vld [vmem:[#allocation10 + $0x60] sm:$0xf]  ;;  %v3611_v19 = vld [vmem:[#allocation10 + $0x68] sm:$0xf0] }
  0xcc   : > { %v3133_v17 = vor.u32 %v3613_v14, %v3130_v15  ;;  %v3610_v20 = vld [vmem:[#allocation10 + $0x64] sm:$0xf]  ;;  %v3118_v21 = vld [vmem:[#allocation10 + $0x6c] sm:$0xf0]  ;;  %v3117_v22 = vor.u32 %v3611_v19, %v3116_v18  ;;  %v3621_v24 = vld [vmem:[#allocation10 + $0xb8] sm:$0xf0] }
  0xcd   : > { %v3160_v23 = vld [vmem:[#allocation10 + $0xb0] sm:$0xf]  ;;  %v3148_v25 = vld [vmem:[#allocation10 + $0x98] sm:$0xf]  ;;  %v3121_v26 = vor.u32 %v3610_v20, %v3118_v21  ;;  %v3104_v27 = vld [vmem:[#allocation10 + $0x48] sm:$0xf] }
  0xce   : > { %1207 = vmatpush.bf16.msra.mxu0 %v3141_v10  ;;  %v3608_v28 = vld [vmem:[#allocation10 + $0x50] sm:$0xf0]  ;;  %v3161_v29 = vor.u32 %v3621_v24, %v3160_v23  ;;  %v3618_v30 = vld [vmem:[#allocation10 + $0xa0] sm:$0xf0]  ;;  %v3607_v31 = vld [vmem:[#allocation10 + $0x4c] sm:$0xf] }
  0xcf   : > { %1220 = vmatpush.bf16.msra.mxu1 %v3145_v11  ;;  %v3106_v32 = vld [vmem:[#allocation10 + $0x54] sm:$0xf0]  ;;  %v3092_v33 = vld [vmem:[#allocation10 + $0x30] sm:$0xf]  ;;  %v3149_v34 = vor.u32 %v3618_v30, %v3148_v25  ;;  %v3105_v35 = vor.u32 %v3608_v28, %v3104_v27  ;;  %v3605_v36 = vld [vmem:[#allocation10 + $0x38] sm:$0xf0] }
  0xd0   : > { %1232 = vmatpush.bf16.msra.mxu2 %v3161_v29  ;;  %v3136_v37 = vld [vmem:[#allocation10 + $0x80] sm:$0xf]  ;;  %v3615_v38 = vld [vmem:[#allocation10 + $0x88] sm:$0xf0]  ;;  %v3109_v39 = vor.u32 %v3607_v31, %v3106_v32  ;;  %v3604_v40 = vld [vmem:[#allocation10 + $0x34] sm:$0xf]  ;;  %v3093_v46 = vor.u32 %v3605_v36, %v3092_v33  ;;  %v1023_v36 = vlaneseq }
  0xd1   : > { %v3094_v41 = vld [vmem:[#allocation10 + $0x3c] sm:$0xf0]  ;;  %v3124_v42 = vld [vmem:[#allocation10 + $0x68] sm:$0xf]  ;;  %v3612_v43 = vld [vmem:[#allocation10 + $0x70] sm:$0xf0]  ;;  %v3137_v45 = vor.u32 %v3615_v38, %v3136_v37 }
  0xd2   : > { %1208 = vmatpush.bf16.msra.mxu0 %v3129_v16  ;;  %v3080_v44 = vld [vmem:[#allocation10 + $0x18] sm:$0xf]  ;;  %v3097_v47 = vor.u32 %v3604_v40, %v3094_v41  ;;  %v3602_v48 = vld [vmem:[#allocation10 + $0x20] sm:$0xf0]  ;;  %v3601_v49 = vld [vmem:[#allocation10 + $0x1c] sm:$0xf]  ;;  %v3125_v51 = vor.u32 %v3612_v43, %v3124_v42 }
  0xd3   : > { %1221 = vmatpush.bf16.msra.mxu1 %v3133_v17  ;;  %v3082_v50 = vld [vmem:[#allocation10 + $0x24] sm:$0xf0]  ;;  %v3081_v52 = vor.u32 %v3602_v48, %v3080_v44  ;;  %v3112_v53 = vld [vmem:[#allocation10 + $0x50] sm:$0xf]  ;;  %v3609_v54 = vld [vmem:[#allocation10 + $0x58] sm:$0xf0] }
  0xd4   : > { %1233 = vmatpush.bf16.msra.mxu2 %v3149_v34  ;;  %v3085_v55 = vor.u32 %v3601_v49, %v3082_v50  ;;  %v3068_v56 = vld [vmem:[#allocation10] sm:$0xf]  ;;  %v3599_v57 = vld [vmem:[#allocation10 + $0x8] sm:$0xf0]  ;;  %v3598_v58 = vld [vmem:[#allocation10 + $0x4] sm:$0xf]  ;;  %v3113_v60 = vor.u32 %v3609_v54, %v3112_v53 }
  0xd5   : > { %v3070_v59 = vld [vmem:[#allocation10 + $0xc] sm:$0xf0]  ;;  %v3069_v61 = vor.u32 %v3599_v57, %v3068_v56  ;;  %v4894_v62 = vld [vmem:[%s4850_s21] sm:$0xff]  ;;  %v3100_v63 = vld [vmem:[#allocation10 + $0x38] sm:$0xf]  ;;  %s5188_s1 = sld [smem:[#allocation47_spill]] }
  0xd6   : > { %1209 = vmatpush.bf16.msra.mxu0 %v3117_v22  ;;  %v3606_v0 = vld [vmem:[#allocation10 + $0x40] sm:$0xf0]  ;;  %v3073_v1 = vor.u32 %v3598_v58, %v3070_v59  ;;  %v1037_v2 = vpack.c.bf16 %v4894_v62, %v4894_v62  ;;  %v3088_v4 = vld [vmem:[#allocation10 + $0x20] sm:$0xf]  ;;  %v3603_v5 = vld [vmem:[#allocation10 + $0x28] sm:$0xf0] }
  0xd7   : > { %1222 = vmatpush.bf16.msra.mxu1 %v3121_v26  ;;  %v3101_v3 = vor.u32 %v3606_v0, %v3100_v63  ;;  %v3089_v6 = vor.u32 %v3603_v5, %v3088_v4  ;;  %v3076_v7 = vld [vmem:[#allocation10 + $0x8] sm:$0xf]  ;;  %v3600_v8 = vld [vmem:[#allocation10 + $0x10] sm:$0xf0]  ;;  %vm1265_vm0 = vcmask 261120   ;;  %s4491_s4 = smov 64  }
  0xd8   : > { %1234 = vmatpush.bf16.msra.mxu2 %v3137_v45  ;;  %v3077_v9 = vor.u32 %v3600_v8, %v3076_v7  ;;  %s4492_s27 = smov 96   ;;  %s4493_s29 = smov 32   ;;  %vm1301_vm1 = vcmask 1043456   ;;  %v1024_v37 = vshrl.u32 %v1023_v36, 7  ;;  %v1026_v38 = vand.u32 127, %v1023_v36 }
  0xd9   : > { %v4494_v40 = vmov -1e+30   ;;  %vm1285_vm3 = vcmask 64512   ;;  %vm1508_vm4 = vcmask 523264   ;;  %vm1510_vm5 = vcmask 785408   ;;  %s5189_s5 = sld [smem:[#allocation55_spill]] }
  0xda   : > { %1210 = vmatpush.bf16.msra.mxu0 %v3105_v35  ;;  %vm1027_vm2 = vcmp.le.s32.totalorder %v1026_v38, %v1024_v37  ;;  %s5190_s23 = sld [smem:[#allocation56_spill]]  ;;  %s3595_s2 = sshll.u32 %s4646_s7, 2 }
  0xdb   : > { %1223 = vmatpush.bf16.msra.mxu1 %v3109_v39  ;;  %v1070_v10 = vld [vmem:[%s5188_s1] sm:$0x7]  ;;  %v1028_v41 = vsel %vm1027_vm2, 0.0, %v4494_v40  ;;  %s5192_s25 = sld [smem:[#allocation58_spill]]  ;;  %s2797_s1 = scalar_lea.sflag [#allocation4], %s4846_s6 }
  0xdc   : > { %1235 = vmatpush.bf16.msra.mxu2 %v3125_v51  ;;  %v1072_v11 = vperm.slane %v1070_v10, 0  ;;  %v1073_v12 = vperm.slane %v1070_v10, 1  ;;  %v1074_v27 = vperm.slane %v1070_v10, 2  ;;  %v3902_v39 = vld [vmem:[%s882_s3] ss:$0 sm:$0xff]  ;;  %s5193_s19 = sld [smem:[#allocation59_spill]] }
  0xdd   : > { %v1033_v42 = vadd.f32 %v3902_v39, %v1028_v41  ;;  %s5194_s3 = sld [smem:[#allocation60_spill]] }
  0xde   : > { %1211 = vmatpush.bf16.msra.mxu0 %v3093_v46 }
  0xdf   : > { %1224 = vmatpush.bf16.msra.mxu1 %v3097_v47 }
  0xe0   : > { %1236 = vmatpush.bf16.msra.mxu2 %v3113_v60 }
  0xe2   : > { %1212 = vmatpush.bf16.msra.mxu0 %v3081_v52 }
  0xe3   : > { %1225 = vmatpush.bf16.msra.mxu1 %v3085_v55 }
  0xe4   : > { %1237 = vmatpush.bf16.msra.mxu2 %v3101_v3 }
  0xe6   : > { %1213 = vmatpush.bf16.msra.mxu0 %v3069_v61 }
  0xe7   : > { %1226 = vmatpush.bf16.msra.mxu1 %v3073_v1 }
  0xe8   : > { %1238 = vmatpush.bf16.msra.mxu2 %v3089_v6 }
  0xe9   : > { %1214 = vmatmul.bf16.vlgmr.msra.gmra.mxu0 %v1037_v2 }
  0xea   : > { %1227 = vmatmul.bf16.vlgmr.msra.gmra.mxu1 %v1037_v2 }
  0xec   : > { %1239 = vmatpush.bf16.msra.mxu2 %v3077_v9 }
  0xef   : > { %1240 = vmatmul.bf16.vlgmr.msra.gmra.mxu2 %v1037_v2 }
 0x166   : > { %v1215_v13 = vpop.f32.mrf.mxu0 }
 0x167   : > { %v1228_v14 = vpop.f32.mrf.mxu1  ;;  %v1216_v15 = vadd.f32 %v1215_v13, %v1072_v11 }
 0x168   : > { %v1229_v16 = vadd.f32 %v1228_v14, %v1073_v12 }
 0x169   : > { %v1262_v18 = vpack.c.bf16 %v1216_v15, %v1216_v15 }
 0x16a   : > { %v1263_v17 = vpack.c.bf16 %v1229_v16, %v1229_v16 }
 0x16b   : > { %v1319_v24 = vunpack.c.l.b16 %v1262_v18 }
 0x16c   : > { %v1324_v19 = vunpack.c.l.b16 %v1263_v17  ;;  %v1270_v20 = vsel %vm1265_vm0, %v1263_v17, 0 }
 0x16d   : > { %1279 = vmatpush.bf16.xpose.msra.mxu3 %v1270_v20  ;;  %v1320_v25 = vpack.c.b16 %v1319_v24, %v1319_v24 }
 0x16e   : > { %v1325_v21 = vpack.c.b16 %v1324_v19, %v1324_v19  ;;  %v1217_v22 = vpop.f32.mrf.mxu0 }
 0x16f   : > { %v1230_v23 = vpop.f32.mrf.mxu1 }
 0x170   : > { %1385 = vrot.lane.b32.xlu2 %v1325_v21, %s4491_s4  ;;  %1326 = vrot.lane.b32.xlu1 %v1325_v21, %s4492_s27 }
 0x172   : > { %v1241_v26 = vpop.f32.mrf.mxu2 }
 0x173   : > { %v1242_v28 = vadd.f32 %v1241_v26, %v1074_v27 }
 0x174   : > { %3162 = vmatmul.msk.bf16.vlgmr.msra.gmra.mxu3 %vm1265_vm0, %v1262_v18 }
 0x175   : > { %v4908_v30 = vpack.c.bf16 %v1242_v28, %v1242_v28 }
 0x177   : > { %v1303_v31 = vsel %vm1301_vm1, %v4908_v30, 0  ;;  %v1360_v12 = vunpack.c.l.b16 %v4908_v30 }
 0x178   : > { %1441 = vrot.lane.b32.xlu2 %v1325_v21, %s4493_s29  ;;  %1321 = vrot.lane.b32.xlu1 %v1320_v25, %s4492_s27 }
 0x179   : > { %1312 = vmatpush.bf16.msrb.mxu3 %v1303_v31  ;;  %v1361_v13 = vpack.c.b16 %v1360_v12, %v1360_v12  ;;  %v3260_v12 = vld [vmem:[#allocation19 + $0x70] sm:$0xf] }
 0x17a   : > { %v1243_v29 = vpop.f32.mrf.mxu2 }
 0x180   : > { %1439 = vrot.lane.b32.xlu1 %v1320_v25, %s4493_s29 }
 0x1ca   : > { %v1386_v32 = vpop.permute.xlu2 %1385 }
 0x1cb   : > { %v1391_v33 = vsel %vm1265_vm0, %v1386_v32, 0 }
 0x1cc   : > { %1400 = vmatpush.bf16.xpose.msrb.mxu2 %v1391_v33 }
 0x1d2   : > { %v1442_v55 = vpop.permute.xlu2 %1441 }
 0x1d3   : > { %v1447_v57 = vsel %vm1265_vm0, %v1442_v55, 0  ;;  %v3627_v55 = vld [vmem:[#allocation11 + $0x28] sm:$0xff] }
 0x1e2   : > { %v1327_v34 = vpop.permute.xlu1 %1326 }
 0x1e3   : > { %v1332_v35 = vsel %vm1265_vm0, %v1327_v34, 0 }
 0x1e4   : > { %1341 = vmatpush.bf16.xpose.msra.mxu3 %v1332_v35 }
 0x1ea   : > { %v1322_v59 = vpop.permute.xlu1 %1321 }
 0x1f2   : > { %v1440_v60 = vpop.permute.xlu1 %1439 }
 0x1f7   : > { %v1281_v43 = vpop.f32.mrf.mxu3 }
 0x1f8   : > { %v1282_v44 = vadd.f32 %v1281_v43, %v1033_v42 }
 0x1fa   : > { %v1286_v45 = vsel %vm1285_vm3, %v1282_v44, -inf }
 0x1fb   : > { %1287 = vmax.xlane.f32.xlu0 %v1286_v45 }
 0x1ff   : > { %v1283_v46 = vpop.f32.mrf.mxu3 }
 0x26e   : > { %v1288_v47 = vpop.xlane.xlu0 %1287 }
 0x26f   : > { %v1289_v48 = vsub.f32 %v1282_v44, %v1288_v47 }
 0x271   : > { %v1290_v49 = vmul.f32 1.442695, %v1289_v48 }
 0x273   : > { %3913 = vpow2.f32 %v1290_v49 }
 0x279   : > { %v3914_v50 = vpop.eup %3913 }
 0x27a   : > { %v1292_v51 = vsel %vm1285_vm3, %v3914_v50, 0.0 }
 0x27b   : > { %1293 = vadd.xlane.f32.xlu0 %v1292_v51 }
 0x28f   : > { %1383 = vrot.lane.b32.xlu0 %v1320_v25, %s4491_s4 }
 0x2ee   : > { %v1294_v52 = vpop.xlane.xlu0 %1293 }
 0x2ef   : > { %3915 = vrcp.f32 %v1294_v52 }
 0x2f5   : > { %v3916_v53 = vpop.eup %3915 }
 0x2f6   : > { %v1296_v54 = vmul.f32 %v3916_v53, %v3914_v50  ;;  %v3629_v53 = vld [vmem:[#allocation11 + $0x38] sm:$0xff] }
 0x2f7   : > { %1564 = vmatpush.bf16.msrb.mxu1 %v3629_v53  ;;  %v3646_v53 = vld [vmem:[#allocation17] sm:$0xff] }
 0x2f8   : > { %v1297_v56 = vpack.c.bf16 %v1296_v54, %v1296_v54  ;;  %v3628_v54 = vld [vmem:[#allocation11 + $0x30] sm:$0xff] }
 0x2fa   : > { %3163 = vmatmul.msk.bf16.vlgmr.msrb.gmra.mxu3 %vm1285_vm3, %v1297_v56  ;;  %v3626_v56 = vld [vmem:[#allocation11 + $0x20] sm:$0xff] }
 0x2fb   : > { %1456 = vmatpush.bf16.xpose.msrb.mxu3 %v1447_v57  ;;  %1565 = vmatpush.bf16.msrb.mxu1 %v3628_v54  ;;  %v3625_v57 = vld [vmem:[#allocation11 + $0x18] sm:$0xff] }
 0x2ff   : > { %1566 = vmatpush.bf16.msrb.mxu1 %v3627_v55 }
 0x301   : > { %v1384_v58 = vpop.permute.xlu0 %1383 }
 0x302   : > { %3166 = vmatmul.msk.bf16.vlgmr.msrb.gmra.mxu2 %vm1265_vm0, %v1384_v58  ;;  %v3624_v58 = vld [vmem:[#allocation11 + $0x10] sm:$0xff] }
 0x303   : > { %1567 = vmatpush.bf16.msrb.mxu1 %v3626_v56 }
 0x307   : > { %1568 = vmatpush.bf16.msrb.mxu1 %v3625_v57 }
 0x30a   : > { %3164 = vmatmul.msk.bf16.vlgmr.msra.gmra.mxu3 %vm1265_vm0, %v1322_v59  ;;  %v3623_v59 = vld [vmem:[#allocation11 + $0x8] sm:$0xff] }
 0x30b   : > { %1569 = vmatpush.bf16.msrb.mxu1 %v3624_v58 }
 0x30f   : > { %1570 = vmatpush.bf16.msrb.mxu1 %v3623_v59 }
 0x31a   : > { %3168 = vmatmul.msk.bf16.vlgmr.msrb.gmra.mxu3 %vm1265_vm0, %v1440_v60  ;;  %v3622_v60 = vld [vmem:[#allocation11] sm:$0xff] }
 0x31b   : > { %1571 = vmatpush.bf16.msrb.mxu1 %v3622_v60 }
 0x37d   : > { %v4924_v61 = vpop.f32.mrf.mxu3 }
 0x385   : > { %v1316_v63 = vpop.f32.mrf.mxu3  ;;  %v1402_v0 = vpop.f32.mrf.mxu2 }
 0x386   : > { %v1403_v1 = vadd.f32 %v1402_v0, %v1033_v42 }
 0x388   : > { %v1406_v2 = vsel %vm1285_vm3, %v1403_v1, -inf }
 0x389   : > { %1407 = vmax.xlane.f32.xlu1 %v1406_v2 }
 0x38d   : > { %v1343_v3 = vpop.f32.mrf.mxu3  ;;  %v1404_v4 = vpop.f32.mrf.mxu2 }
 0x38e   : > { %v1344_v5 = vadd.f32 %v1343_v3, %v1033_v42 }
 0x390   : > { %v1347_v6 = vsel %vm1285_vm3, %v1344_v5, -inf }
 0x391   : > { %1348 = vmax.xlane.f32.xlu2 %v1347_v6  ;;  %v3903_v6 = vld [vmem:[#allocation13] ss:$0 sm:$0xff] }
 0x395   : > { %v1345_v7 = vpop.f32.mrf.mxu3 }
 0x39d   : > { %v1458_v8 = vpop.f32.mrf.mxu3 }
 0x39e   : > { %v1459_v9 = vadd.f32 %v1458_v8, %v1033_v42 }
 0x3a0   : > { %v1462_v10 = vsel %vm1285_vm3, %v1459_v9, -inf }
 0x3a1   : > { %1463 = vmax.xlane.f32.xlu0 %v1462_v10 }
 0x3a5   : > { %v1460_v11 = vpop.f32.mrf.mxu3 }
 0x3a6   : > { %v4495_v11 = vmov 128.0  }
 0x3b5   : > { %1418 = vrot.lane.b32.xlu0 %v1361_v13, %s4491_s4 }
 0x3fc   : > { %v1408_v14 = vpop.xlane.xlu1 %1407 }
 0x3fd   : > { %v1409_v15 = vsub.f32 %v1403_v1, %v1408_v14  ;;  %v3252_v14 = vld [vmem:[#allocation19 + $0x60] sm:$0xf] }
 0x3ff   : > { %v1410_v16 = vmul.f32 1.442695, %v1409_v15  ;;  %v3643_v15 = vld [vmem:[#allocation19 + $0x64] sm:$0xf0] }
 0x401   : > { %3917 = vpow2.f32 %v1410_v16  ;;  %v3253_v16 = vor.u32 %v3643_v15, %v3252_v14 }
 0x404   : > { %v1349_v17 = vpop.xlane.xlu2 %1348 }
 0x405   : > { %v1350_v18 = vsub.f32 %v1344_v5, %v1349_v17 }
 0x407   : > { %v3918_v19 = vpop.eup %3917  ;;  %v1351_v20 = vmul.f32 1.442695, %v1350_v18  ;;  %v3244_v18 = vld [vmem:[#allocation19 + $0x50] sm:$0xf] }
 0x408   : > { %v1412_v21 = vsel %vm1285_vm3, %v3918_v19, 0.0 }
 0x409   : > { %3919 = vpow2.f32 %v1351_v20  ;;  %1413 = vadd.xlane.f32.xlu1 %v1412_v21  ;;  %v3653_v20 = vld [vmem:[#allocation17 + $0x38] sm:$0xff] }
 0x40f   : > { %v3920_v22 = vpop.eup %3919 }
 0x410   : > { %v1353_v23 = vsel %vm1285_vm3, %v3920_v22, 0.0 }
 0x411   : > { %1354 = vadd.xlane.f32.xlu2 %v1353_v23  ;;  %v3639_v23 = vld [vmem:[#allocation19 + $0x44] sm:$0xf0] }
 0x414   : > { %v1464_v24 = vpop.xlane.xlu0 %1463 }
 0x415   : > { %v1465_v25 = vsub.f32 %v1459_v9, %v1464_v24 }
 0x417   : > { %v1466_v26 = vmul.f32 1.442695, %v1465_v25 }
 0x419   : > { %3921 = vpow2.f32 %v1466_v26  ;;  %v3228_v26 = vld [vmem:[#allocation19 + $0x30] sm:$0xf] }
 0x41f   : > { %v3922_v27 = vpop.eup %3921 }
 0x420   : > { %v1468_v28 = vsel %vm1285_vm3, %v3922_v27, 0.0 }
 0x421   : > { %1469 = vadd.xlane.f32.xlu1 %v1468_v28 }
 0x427   : > { %v1419_v29 = vpop.permute.xlu0 %1418 }
 0x428   : > { %v1424_v30 = vsel %vm1301_vm1, %v1419_v29, 0 }
 0x429   : > { %1362 = vrot.lane.b32.xlu2 %v1361_v13, %s4492_s27  ;;  %1433 = vmatpush.bf16.msra.mxu2 %v1424_v30  ;;  %v3220_v30 = vld [vmem:[#allocation19 + $0x20] sm:$0xf] }
 0x43a   : > { %1474 = vrot.lane.b32.xlu1 %v1361_v13, %s4493_s29  ;;  %v3645_v13 = vld [vmem:[#allocation19 + $0x74] sm:$0xf0] }
 0x47c   : > { %v1414_v31 = vpop.xlane.xlu1 %1413 }
 0x47d   : > { %3923 = vrcp.f32 %v1414_v31  ;;  %v3635_v31 = vld [vmem:[#allocation19 + $0x24] sm:$0xf0] }
 0x483   : > { %v3924_v32 = vpop.eup %3923 }
 0x484   : > { %v1416_v33 = vmul.f32 %v3924_v32, %v3918_v19  ;;  %v1355_v34 = vpop.xlane.xlu2 %1354  ;;  %v3641_v19 = vld [vmem:[#allocation19 + $0x54] sm:$0xf0] }
 0x485   : > { %3925 = vrcp.f32 %v1355_v34  ;;  %v3212_v34 = vld [vmem:[#allocation19 + $0x10] sm:$0xf] }
 0x486   : > { %v1417_v35 = vpack.c.bf16 %v1416_v33, %v1416_v33  ;;  %v3221_v33 = vor.u32 %v3635_v31, %v3220_v30 }
 0x488   : > { %3167 = vmatmul.msk.bf16.vlgmr.msra.gmra.mxu2 %vm1285_vm3, %v1417_v35  ;;  %v3633_v35 = vld [vmem:[#allocation19 + $0x14] sm:$0xf0] }
 0x48b   : > { %v3926_v36 = vpop.eup %3925 }
 0x48c   : > { %v1357_v37 = vmul.f32 %v3926_v36, %v3920_v22  ;;  %v1363_v38 = vpop.permute.xlu2 %1362  ;;  %v3245_v22 = vor.u32 %v3641_v19, %v3244_v18  ;;  %v3642_v18 = vld [vmem:[#allocation19 + $0x64] sm:$0xf] }
 0x48d   : > { %v1368_v39 = vsel %vm1301_vm1, %v1363_v38, 0  ;;  %v3204_v38 = vld [vmem:[#allocation19] sm:$0xf] }
 0x48e   : > { %1377 = vmatpush.bf16.msrb.mxu0 %v1368_v39  ;;  %v1358_v40 = vpack.c.bf16 %v1357_v37, %v1357_v37  ;;  %v3213_v37 = vor.u32 %v3633_v35, %v3212_v34  ;;  %v3631_v39 = vld [vmem:[#allocation19 + $0x4] sm:$0xf0] }
 0x491   : > { %3165 = vmatmul.msk.bf16.vlgmr.msrb.gmra.mxu0 %vm1285_vm3, %v1358_v40 }
 0x494   : > { %v1470_v41 = vpop.xlane.xlu1 %1469 }
 0x495   : > { %3927 = vrcp.f32 %v1470_v41 }
 0x496   : > { %3929 = vrcp.f32 %v4495_v11 }
 0x49b   : > { %v3928_v42 = vpop.eup %3927 }
 0x49c   : > { %v1472_v43 = vmul.f32 %v3928_v42, %v3922_v27  ;;  %v3930_v17 = vpop.eup %3929  ;;  %v3637_v27 = vld [vmem:[#allocation19 + $0x34] sm:$0xf0]  ;;  %v3205_v42 = vor.u32 %v3631_v39, %v3204_v38  ;;  %v3634_v38 = vld [vmem:[#allocation19 + $0x24] sm:$0xf]  ;;  %v3222_v39 = vld [vmem:[#allocation19 + $0x28] sm:$0xf0] }
 0x49d   : > { %v1583_v21 = vmul.f32 128.0, %v3930_v17  ;;  %v3229_v29 = vor.u32 %v3637_v27, %v3228_v26  ;;  %vm1587_vm6 = vweird.f32 %v3930_v17  ;;  %v3638_v27 = vld [vmem:[#allocation19 + $0x44] sm:$0xf] }
 0x49e   : > { %v1473_v46 = vpack.c.bf16 %v1472_v43, %v1472_v43 }
 0x49f   : > { %v1584_v24 = vsub.f32 1.0, %v1583_v21 }
 0x4a1   : > { %v1585_v28 = vmul.f32 %v3930_v17, %v1584_v24 }
 0x4a3   : > { %v1586_v32 = vadd.f32 %v3930_v17, %v1585_v28  ;;  %v3238_v28 = vld [vmem:[#allocation19 + $0x48] sm:$0xf0] }
 0x4a4   : > { %v3241_v30 = vor.u32 %v3638_v27, %v3238_v28 }
 0x4a5   : > { %v4950_v36 = vsel %vm1587_vm6, %v3930_v17, %v1586_v32  ;;  %v3262_v17 = vld [vmem:[#allocation19 + $0x78] sm:$0xf0]  ;;  %v3636_v32 = vld [vmem:[#allocation19 + $0x34] sm:$0xf] }
 0x4ac   : > { %v1475_v44 = vpop.permute.xlu1 %1474 }
 0x4ad   : > { %v1480_v45 = vsel %vm1301_vm1, %v1475_v44, 0 }
 0x4ae   : > { %1489 = vmatpush.bf16.msra.mxu0 %v1480_v45  ;;  %v1022_v45 = vld [vmem:[%s4857_s22] sm:$0xff] }
 0x4b1   : > { %3169 = vmatmul.msk.bf16.vlgmr.msra.gmra.mxu0 %vm1285_vm3, %v1473_v46  ;;  %v4954_v46 = vpack.c.bf16 %v1022_v45, %v1022_v45 }
 0x4b2   : > { %1813 = vmatpush.bf16.msrb.mxu0 %v3653_v20  ;;  %v3254_v20 = vld [vmem:[#allocation19 + $0x68] sm:$0xf0] }
 0x4b3   : > { %v3257_v21 = vor.u32 %v3642_v18, %v3254_v20 }
 0x50b   : > { %v1435_v47 = vpop.f32.mrf.mxu2 }
 0x50e   : > { %v1379_v48 = vpop.f32.mrf.mxu0 }
 0x50f   : > { %1496 = vrot.lane.b32.xlu2 %v1379_v48, %s4493_s29  ;;  %v3651_v48 = vld [vmem:[#allocation17 + $0x28] sm:$0xff] }
 0x513   : > { %v1437_v49 = vpop.f32.mrf.mxu2 }
 0x514   : > { %v3650_v49 = vld [vmem:[#allocation17 + $0x20] sm:$0xff] }
 0x516   : > { %v1381_v50 = vpop.f32.mrf.mxu0 }
 0x517   : > { %1500 = vrot.lane.b32.xlu2 %v1435_v47, %s4491_s4  ;;  %v3652_v47 = vld [vmem:[#allocation17 + $0x30] sm:$0xff]  ;;  %v3649_v50 = vld [vmem:[#allocation17 + $0x18] sm:$0xff] }
 0x518   : > { %1814 = vmatpush.bf16.msrb.mxu0 %v3652_v47  ;;  %v3206_v47 = vld [vmem:[#allocation19 + $0x8] sm:$0xf0] }
 0x51c   : > { %1815 = vmatpush.bf16.msrb.mxu0 %v3651_v48 }
 0x520   : > { %1816 = vmatpush.bf16.msrb.mxu0 %v3650_v49 }
 0x524   : > { %1817 = vmatpush.bf16.msrb.mxu0 %v3649_v50 }
 0x52e   : > { %v1491_v51 = vpop.f32.mrf.mxu0 }
 0x52f   : > { %1504 = vrot.lane.b32.xlu0 %v1491_v51, %s4492_s27  ;;  %v3648_v51 = vld [vmem:[#allocation17 + $0x10] sm:$0xff] }
 0x530   : > { %1818 = vmatpush.bf16.msrb.mxu0 %v3648_v51 }
 0x536   : > { %v1493_v52 = vpop.f32.mrf.mxu0 }
 0x537   : > { %v3647_v52 = vld [vmem:[#allocation17 + $0x8] sm:$0xff] }
 0x538   : > { %1819 = vmatpush.bf16.msrb.mxu0 %v3647_v52  ;;  %v1034_v52 = vld [vmem:[%s891_s14] sm:$0x1]  ;;  %s2807_s14 = scalar_lea.hbm %s5194_s3, %s3595_s2  ;;  %s4393_s2 = scalar_lea.hbm %s5194_s3, 8 }
 0x539   : > { %vm1035_vm10 = vcmp.gt.f32.partialorder %v1034_v52, 0.0 }
 0x53c   : > { %1820 = vmatpush.bf16.msrb.mxu0 %v3646_v53 }
 0x569   : > { %v1497_v63 = vpop.permute.xlu2 %1496 }
 0x56a   : > { %v1507_v1 = vsel %vm1265_vm0, %v4924_v61, %v1497_v63  ;;  %v3261_v61 = vor.u32 %v3645_v13, %v3260_v12 }
 0x56c   : > { %1718 = vmatpush.bf16.msrb.mxu2 %v3261_v61 }
 0x570   : > { %1719 = vmatpush.bf16.msrb.mxu2 %v3253_v16  ;;  %v3644_v16 = vld [vmem:[#allocation19 + $0x74] sm:$0xf] }
 0x571   : > { %v1501_v0 = vpop.permute.xlu2 %1500  ;;  %v3265_v19 = vor.u32 %v3644_v16, %v3262_v17 }
 0x572   : > { %v1509_v2 = vsel %vm1508_vm4, %v1507_v1, %v1501_v0  ;;  %v3904_v1 = vld [vmem:[#allocation14] ss:$0 sm:$0xff] }
 0x573   : > { %1731 = vmatpush.bf16.msra.mxu3 %v3265_v19 }
 0x574   : > { %1720 = vmatpush.bf16.msrb.mxu2 %v3245_v22  ;;  %v3906_v22 = vld [vmem:[%s5095_s11] ss:$0 sm:$0xff] }
 0x577   : > { %1732 = vmatpush.bf16.msra.mxu3 %v3257_v21 }
 0x5a1   : > { %v1505_v3 = vpop.permute.xlu0 %1504 }
 0x5a2   : > { %v1511_v4 = vsel %vm1510_vm5, %v1509_v2, %v1505_v3 }
 0x5a3   : > { %v1512_v5 = vpack.c.bf16 %v1511_v4, %v1511_v4  ;;  %v3905_v4 = vld [vmem:[#allocation16] ss:$0 sm:$0xff] }
 0x5a5   : > { %1572 = vmatmul.bf16.vlgmr.msrb.gmra.mxu1 %v1512_v5 }
 0x622   : > { %v1573_v7 = vpop.f32.mrf.mxu1 }
 0x623   : > { %v1574_v8 = vadd.f32 %v3903_v6, %v1573_v7 }
 0x625   : > { %v1577_v9 = vadd.f32 %v1574_v8, %v4894_v62  ;;  %v3236_v62 = vld [vmem:[#allocation19 + $0x40] sm:$0xf]  ;;  %v4965_v8 = vld [vmem:[%s5097_s13] sm:$0x3] }
 0x626   : > { %v3237_v25 = vor.u32 %v3639_v23, %v3236_v62  ;;  %v3640_v62 = vld [vmem:[#allocation19 + $0x54] sm:$0xf]  ;;  %v3246_v23 = vld [vmem:[#allocation19 + $0x58] sm:$0xf0] }
 0x627   : > { %1580 = vadd.xlane.f32.xlu2 %v1577_v9 }
 0x628   : > { %1721 = vmatpush.bf16.msrb.mxu2 %v3237_v25  ;;  %v3249_v25 = vor.u32 %v3640_v62, %v3246_v23 }
 0x62a   : > { %v1575_v10 = vpop.f32.mrf.mxu1  ;;  %1733 = vmatpush.bf16.msra.mxu3 %v3249_v25 }
 0x62c   : > { %1722 = vmatpush.bf16.msrb.mxu2 %v3229_v29 }
 0x62e   : > { %1734 = vmatpush.bf16.msra.mxu3 %v3241_v30 }
 0x630   : > { %1723 = vmatpush.bf16.msrb.mxu2 %v3221_v33  ;;  %v3230_v33 = vld [vmem:[#allocation19 + $0x38] sm:$0xf0] }
 0x634   : > { %1724 = vmatpush.bf16.msrb.mxu2 %v3213_v37  ;;  %v3233_v37 = vor.u32 %v3636_v32, %v3230_v33 }
 0x636   : > { %1735 = vmatpush.bf16.msra.mxu3 %v3233_v37 }
 0x638   : > { %1725 = vmatpush.bf16.msrb.mxu2 %v3205_v42  ;;  %v3214_v42 = vld [vmem:[#allocation19 + $0x18] sm:$0xf0] }
 0x63b   : > { %1726 = vmatmul.bf16.vlgmr.msrb.gmra.mxu2 %v4954_v46 }
 0x69a   : > { %v1581_v40 = vpop.xlane.xlu2 %1580 }
 0x69b   : > { %v1589_v41 = vmul.f32 %v4950_v36, %v1581_v40  ;;  %v3225_v40 = vor.u32 %v3634_v38, %v3222_v39 }
 0x69d   : > { %v1590_v43 = vsub.f32 %v1577_v9, %v1589_v41  ;;  %v1634_v9 = vperm.slane %v4965_v8, 0  ;;  %1736 = vmatpush.bf16.msra.mxu3 %v3225_v40  ;;  %v3632_v41 = vld [vmem:[#allocation19 + $0x14] sm:$0xf] }
 0x69e   : > { %v3217_v45 = vor.u32 %v3632_v41, %v3214_v42 }
 0x69f   : > { %v1591_v44 = vmul.f32 %v1590_v43, %v1590_v43 }
 0x6a1   : > { %1592 = vadd.xlane.f32.xlu0 %v1591_v44  ;;  %1737 = vmatpush.bf16.msra.mxu3 %v3217_v45 }
 0x6be   : > { %v1727_v10 = vpop.f32.mrf.mxu2 }
 0x6bf   : > { %v1728_v11 = vadd.f32 %v1727_v10, %v1634_v9 }
 0x6c1   : > { %v1844_v12 = vpack.c.bf16 %v1728_v11, %v1728_v11 }
 0x6c3   : > { %v1853_v13 = vsel %vm1265_vm0, %v1844_v12, 0  ;;  %v1905_v14 = vunpack.c.l.b16 %v1844_v12 }
 0x6c4   : > { %1862 = vmatpush.bf16.xpose.msra.mxu1 %v1853_v13 }
 0x6c5   : > { %v1906_v61 = vpack.c.b16 %v1905_v14, %v1905_v14 }
 0x6c6   : > { %v1729_v15 = vpop.f32.mrf.mxu2 }
 0x6c7   : > { %1907 = vrot.lane.b32.xlu1 %v1906_v61, %s4492_s27 }
 0x6cf   : > { %1966 = vrot.lane.b32.xlu1 %v1906_v61, %s4491_s4 }
 0x714   : > { %v1593_v54 = vpop.xlane.xlu0 %1592 }
 0x715   : > { %v1594_v55 = vmul.f32 %v1593_v54, %v4950_v36  ;;  %v4496_v54 = vmov 0.0  }
 0x717   : > { %v1595_v56 = vadd.f32 1e-05, %v1594_v55  ;;  %v1036_v55 = vsel %vm1035_vm10, -1e+30, %v4496_v54 }
 0x719   : > { %3931 = vrsqrt.f32 %v1595_v56  ;;  %vm1602_vm8 = vweird.f32 %v1595_v56 }
 0x71f   : > { %v3932_v57 = vpop.eup %3931 }
 0x720   : > { %v1597_v58 = vmul.f32 %v3932_v57, %v1595_v56  ;;  %vm1603_vm7 = vweird.f32 %v3932_v57  ;;  %v1847_v56 = vperm.slane %v1036_v55, 0 }
 0x721   : > { %vm1604_vm9 = vmor %vm1602_vm8, %vm1603_vm7 }
 0x722   : > { %v1598_v59 = vmul.f32 %v3932_v57, %v1597_v58 }
 0x724   : > { %v1599_v60 = vmul.f32 0.5, %v1598_v59 }
 0x726   : > { %v1600_v63 = vsub.f32 1.5, %v1599_v60 }
 0x728   : > { %v1601_v0 = vmul.f32 %v3932_v57, %v1600_v63 }
 0x72a   : > { %v1605_v2 = vsel %vm1604_vm9, %v3932_v57, %v1601_v0 }
 0x72b   : > { %v1606_v3 = vmul.f32 %v1605_v2, %v1590_v43  ;;  %v3630_v43 = vld [vmem:[#allocation19 + $0x4] sm:$0xf]  ;;  %v1635_v2 = vperm.slane %v4965_v8, 1 }
 0x72c   : > { %v3209_v48 = vor.u32 %v3630_v43, %v3206_v47 }
 0x72d   : > { %v1610_v5 = vmul.f32 %v3904_v1, %v1606_v3 }
 0x72e   : > { %1738 = vmatpush.bf16.msra.mxu3 %v3209_v48 }
 0x72f   : > { %v4958_v6 = vadd.f32 %v3905_v4, %v1610_v5 }
 0x731   : > { %v1744_v7 = vpack.c.bf16 %v4958_v6, %v4958_v6  ;;  %1739 = vmatmul.bf16.vlgmr.msra.gmra.mxu3 %v4954_v46 }
 0x733   : > { %1821 = vmatmul.bf16.vlgmr.msrb.gmra.mxu0 %v1744_v7 }
 0x739   : > { %v1908_v44 = vpop.permute.xlu1 %1907 }
 0x73a   : > { %v1913_v49 = vsel %vm1265_vm0, %v1908_v44, 0 }
 0x73b   : > { %1922 = vmatpush.bf16.xpose.msrb.mxu3 %v1913_v49 }
 0x741   : > { %v1967_v50 = vpop.permute.xlu1 %1966 }
 0x742   : > { %v1972_v51 = vsel %vm1265_vm0, %v1967_v50, 0 }
 0x743   : > { %1981 = vmatpush.bf16.xpose.msrb.mxu1 %v1972_v51 }
 0x7b0   : > { %v1822_v24 = vpop.f32.mrf.mxu0 }
 0x7b1   : > { %v1823_v26 = vadd.f32 %v3906_v22, %v1822_v24 }
 0x7b3   : > { %v1843_v29 = vpack.c.bf16 %v1823_v26, %v1823_v26 }
 0x7b4   : > { %v1740_v3 = vpop.f32.mrf.mxu3 }
 0x7b5   : > { %v1900_v31 = vunpack.c.l.b16 %v1843_v29  ;;  %3298 = vmatmul.msk.bf16.vlgmr.msra.gmra.mxu1 %vm1265_vm0, %v1843_v29  ;;  %v1741_v4 = vadd.f32 %v1740_v3, %v1635_v2 }
 0x7b7   : > { %v1901_v34 = vpack.c.b16 %v1900_v31, %v1900_v31  ;;  %v1845_v5 = vpack.c.bf16 %v1741_v4, %v1741_v4 }
 0x7b8   : > { %v1824_v35 = vpop.f32.mrf.mxu0 }
 0x7b9   : > { %2020 = vrot.lane.b32.xlu2 %v1901_v34, %s4493_s29  ;;  %1902 = vrot.lane.b32.xlu1 %v1901_v34, %s4492_s27  ;;  %v1884_v7 = vsel %vm1301_vm1, %v1845_v5, 0  ;;  %v1941_v24 = vunpack.c.l.b16 %v1845_v5 }
 0x7ba   : > { %1893 = vmatpush.bf16.msra.mxu2 %v1884_v7 }
 0x7bb   : > { %v1942_v25 = vpack.c.b16 %v1941_v24, %v1941_v24  ;;  %v3907_v24 = vld [vmem:[%s5099_s15] ss:$0 sm:$0xff] }
 0x7bc   : > { %v1742_v9 = vpop.f32.mrf.mxu3 }
 0x7c1   : > { %2022 = vrot.lane.b32.xlu1 %v1906_v61, %s4493_s29 }
 0x7c9   : > { %1964 = vrot.lane.b32.xlu1 %v1901_v34, %s4491_s4 }
 0x813   : > { %v2021_v0 = vpop.permute.xlu2 %2020 }
 0x82b   : > { %v1903_v53 = vpop.permute.xlu1 %1902 }
 0x82c   : > { %3300 = vmatmul.msk.bf16.vlgmr.msrb.gmra.mxu3 %vm1265_vm0, %v1903_v53 }
 0x832   : > { %v1864_v57 = vpop.f32.mrf.mxu1 }
 0x833   : > { %v1865_v58 = vadd.f32 %v1864_v57, %v1847_v56  ;;  %v2023_v59 = vpop.permute.xlu1 %2022 }
 0x834   : > { %v2028_v60 = vsel %vm1265_vm0, %v2023_v59, 0 }
 0x835   : > { %2037 = vmatpush.bf16.xpose.msra.mxu3 %v2028_v60  ;;  %v1868_v63 = vsel %vm1285_vm3, %v1865_v58, -inf }
 0x836   : > { %1869 = vmax.xlane.f32.xlu1 %v1868_v63 }
 0x83a   : > { %v1866_v46 = vpop.f32.mrf.mxu1 }
 0x83b   : > { %v1965_v1 = vpop.permute.xlu1 %1964 }
 0x83c   : > { %3302 = vmatmul.msk.bf16.vlgmr.msrb.gmra.mxu1 %vm1265_vm0, %v1965_v1  ;;  %3304 = vmatmul.msk.bf16.vlgmr.msra.gmra.mxu3 %vm1265_vm0, %v2021_v0 }
 0x8a9   : > { %v1870_v10 = vpop.xlane.xlu1 %1869 }
 0x8aa   : > { %v1871_v11 = vsub.f32 %v1865_v58, %v1870_v10 }
 0x8ac   : > { %v1872_v12 = vmul.f32 1.442695, %v1871_v11 }
 0x8ae   : > { %3933 = vpow2.f32 %v1872_v12  ;;  %v3661_v12 = vld [vmem:[#allocation20 + $0x38] sm:$0xff] }
 0x8af   : > { %v1924_v13 = vpop.f32.mrf.mxu3  ;;  %2143 = vmatpush.bf16.msra.mxu1 %v3661_v12 }
 0x8b0   : > { %v1925_v19 = vadd.f32 %v1924_v13, %v1847_v56  ;;  %v3660_v13 = vld [vmem:[#allocation20 + $0x30] sm:$0xff] }
 0x8b2   : > { %v1928_v21 = vsel %vm1285_vm3, %v1925_v19, -inf }
 0x8b3   : > { %2144 = vmatpush.bf16.msra.mxu1 %v3660_v13  ;;  %v3406_v13 = vld [vmem:[#allocation22 + $0x90] sm:$0xf0] }
 0x8b4   : > { %v3934_v14 = vpop.eup %3933 }
 0x8b5   : > { %v1874_v61 = vsel %vm1285_vm3, %v3934_v14, 0.0 }
 0x8b6   : > { %1875 = vadd.xlane.f32.xlu2 %v1874_v61  ;;  %v3658_v61 = vld [vmem:[#allocation20 + $0x20] sm:$0xff] }
 0x8b7   : > { %v1926_v15 = vpop.f32.mrf.mxu3 }
 0x8b8   : > { %v3657_v15 = vld [vmem:[#allocation20 + $0x18] sm:$0xff] }
 0x8b9   : > { %v1983_v16 = vpop.f32.mrf.mxu1 }
 0x8ba   : > { %v1984_v17 = vadd.f32 %v1983_v16, %v1847_v56  ;;  %v3656_v16 = vld [vmem:[#allocation20 + $0x10] sm:$0xff] }
 0x8bc   : > { %v1987_v8 = vsel %vm1285_vm3, %v1984_v17, -inf }
 0x8bd   : > { %1988 = vmax.xlane.f32.xlu0 %v1987_v8  ;;  %v3654_v8 = vld [vmem:[#allocation20] sm:$0xff] }
 0x8bf   : > { %v2039_v18 = vpop.f32.mrf.mxu3 }
 0x8c0   : > { %v2040_v62 = vadd.f32 %v2039_v18, %v1847_v56 }
 0x8c1   : > { %v1985_v20 = vpop.f32.mrf.mxu1 }
 0x8c2   : > { %v2043_v23 = vsel %vm1285_vm3, %v2040_v62, -inf }
 0x8c5   : > { %1929 = vmax.xlane.f32.xlu0 %v1928_v21 }
 0x8c7   : > { %v2041_v22 = vpop.f32.mrf.mxu3 }
 0x8cd   : > { %2044 = vmax.xlane.f32.xlu0 %v2043_v23 }
 0x8e1   : > { %1943 = vrot.lane.b32.xlu0 %v1942_v25, %s4492_s27 }
 0x929   : > { %v1876_v26 = vpop.xlane.xlu2 %1875 }
 0x92a   : > { %3935 = vrcp.f32 %v1876_v26 }
 0x930   : > { %v3936_v27 = vpop.eup %3935  ;;  %v1989_v28 = vpop.xlane.xlu0 %1988 }
 0x931   : > { %v1878_v29 = vmul.f32 %v3936_v27, %v3934_v14  ;;  %v1990_v30 = vsub.f32 %v1984_v17, %v1989_v28  ;;  %v3659_v14 = vld [vmem:[#allocation20 + $0x28] sm:$0xff] }
 0x932   : > { %2145 = vmatpush.bf16.msra.mxu1 %v3659_v14  ;;  %v3655_v17 = vld [vmem:[#allocation20 + $0x8] sm:$0xff] }
 0x933   : > { %v1879_v31 = vpack.c.bf16 %v1878_v29, %v1878_v29  ;;  %v1991_v32 = vmul.f32 1.442695, %v1990_v30  ;;  %v3452_v29 = vld [vmem:[#allocation22 + $0xe0] sm:$0xf]  ;;  %v3692_v30 = vld [vmem:[#allocation22 + $0xec] sm:$0xf0] }
 0x934   : > { %v3412_v14 = vld [vmem:[#allocation22 + $0x88] sm:$0xf] }
 0x935   : > { %3937 = vpow2.f32 %v1991_v32  ;;  %3299 = vmatmul.msk.bf16.vlgmr.msra.gmra.mxu2 %vm1285_vm3, %v1879_v31  ;;  %v3690_v31 = vld [vmem:[#allocation22 + $0xe4] sm:$0xf]  ;;  %v3453_v32 = vor.u32 %v3692_v30, %v3452_v29  ;;  %v3372_v30 = vld [vmem:[#allocation22 + $0x40] sm:$0xf] }
 0x936   : > { %2146 = vmatpush.bf16.msra.mxu1 %v3658_v61  ;;  %v3681_v61 = vld [vmem:[#allocation22 + $0x94] sm:$0xf0] }
 0x938   : > { %v1930_v33 = vpop.xlane.xlu0 %1929 }
 0x939   : > { %v1931_v34 = vsub.f32 %v1925_v19, %v1930_v33  ;;  %v3454_v33 = vld [vmem:[#allocation22 + $0xf0] sm:$0xf0] }
 0x93a   : > { %2147 = vmatpush.bf16.msra.mxu1 %v3657_v15 }
 0x93b   : > { %v3938_v35 = vpop.eup %3937  ;;  %v1932_v37 = vmul.f32 1.442695, %v1931_v34  ;;  %v3460_v34 = vld [vmem:[#allocation22 + $0xe8] sm:$0xf] }
 0x93c   : > { %v1993_v38 = vsel %vm1285_vm3, %v3938_v35, 0.0 }
 0x93d   : > { %3939 = vpow2.f32 %v1932_v37  ;;  %1994 = vadd.xlane.f32.xlu1 %v1993_v38  ;;  %v3457_v37 = vor.u32 %v3690_v31, %v3454_v33  ;;  %v3672_v31 = vld [vmem:[#allocation22 + $0x4c] sm:$0xf0] }
 0x93e   : > { %2148 = vmatpush.bf16.msra.mxu1 %v3656_v16  ;;  %v3413_v16 = vor.u32 %v3681_v61, %v3412_v14  ;;  %v3373_v33 = vor.u32 %v3672_v31, %v3372_v30  ;;  %v3724_v14 = vld [vmem:[#allocation23 + $0xf0] sm:$0xff] }
 0x93f   : > { %2403 = vmatpush.bf16.msrb.mxu3 %v3457_v37  ;;  %v3673_v37 = vld [vmem:[#allocation22 + $0x54] sm:$0xf0] }
 0x940   : > { %v2045_v39 = vpop.xlane.xlu0 %2044 }
 0x941   : > { %v2046_v40 = vsub.f32 %v2040_v62, %v2045_v39  ;;  %v3691_v39 = vld [vmem:[#allocation22 + $0xec] sm:$0xf] }
 0x942   : > { %2149 = vmatpush.bf16.msra.mxu1 %v3655_v17  ;;  %v3679_v17 = vld [vmem:[#allocation22 + $0x8c] sm:$0xf] }
 0x943   : > { %v3940_v41 = vpop.eup %3939  ;;  %v2047_v42 = vmul.f32 1.442695, %v2046_v40  ;;  %v3462_v40 = vld [vmem:[#allocation22 + $0xf8] sm:$0xf0] }
 0x944   : > { %v1934_v43 = vsel %vm1285_vm3, %v3940_v41, 0.0 }
 0x945   : > { %3941 = vpow2.f32 %v2047_v42  ;;  %1935 = vadd.xlane.f32.xlu0 %v1934_v43 }
 0x946   : > { %2150 = vmatpush.bf16.msra.mxu1 %v3654_v8  ;;  %v3414_v8 = vld [vmem:[#allocation22 + $0x98] sm:$0xf0] }
 0x94b   : > { %v3942_v44 = vpop.eup %3941 }
 0x94c   : > { %v2049_v45 = vsel %vm1285_vm3, %v3942_v44, 0.0 }
 0x94d   : > { %2050 = vadd.xlane.f32.xlu1 %v2049_v45  ;;  %v3436_v45 = vld [vmem:[#allocation22 + $0xc0] sm:$0xf] }
 0x953   : > { %v1944_v47 = vpop.permute.xlu0 %1943 }
 0x954   : > { %v1949_v48 = vsel %vm1301_vm1, %v1944_v47, 0  ;;  %v3688_v47 = vld [vmem:[#allocation22 + $0xcc] sm:$0xf0] }
 0x955   : > { %1958 = vmatpush.bf16.msra.mxu0 %v1949_v48  ;;  %v3686_v48 = vld [vmem:[#allocation22 + $0xc4] sm:$0xf] }
 0x959   : > { %1999 = vrot.lane.b32.xlu0 %v1942_v25, %s4491_s4 }
 0x966   : > { %2055 = vrot.lane.b32.xlu1 %v1942_v25, %s4493_s29 }
 0x9b0   : > { %v1995_v51 = vpop.xlane.xlu1 %1994 }
 0x9b8   : > { %v1936_v49 = vpop.xlane.xlu0 %1935  ;;  %v1895_v50 = vpop.f32.mrf.mxu2 }
 0x9b9   : > { %3943 = vrcp.f32 %v1936_v49  ;;  %v3437_v49 = vor.u32 %v3688_v47, %v3436_v45  ;;  %v3666_v45 = vld [vmem:[#allocation22 + $0x24] sm:$0xf] }
 0x9ba   : > { %3945 = vrcp.f32 %v1995_v51  ;;  %v3444_v51 = vld [vmem:[#allocation22 + $0xc8] sm:$0xf] }
 0x9bf   : > { %v3944_v52 = vpop.eup %3943 }
 0x9c0   : > { %v1938_v53 = vmul.f32 %v3944_v52, %v3940_v41  ;;  %v1897_v54 = vpop.f32.mrf.mxu2  ;;  %v3946_v56 = vpop.eup %3945  ;;  %v3465_v41 = vor.u32 %v3691_v39, %v3462_v40  ;;  %v3689_v52 = vld [vmem:[#allocation22 + $0xd4] sm:$0xf0]  ;;  %v3671_v40 = vld [vmem:[#allocation22 + $0x4c] sm:$0xf] }
 0x9c1   : > { %v1997_v57 = vmul.f32 %v3946_v56, %v3938_v35  ;;  %v2051_v58 = vpop.xlane.xlu1 %2050  ;;  %v3693_v35 = vld [vmem:[#allocation22 + $0xf4] sm:$0xf0]  ;;  %v3445_v54 = vor.u32 %v3689_v52, %v3444_v51  ;;  %v3446_v56 = vld [vmem:[#allocation22 + $0xd8] sm:$0xf0] }
 0x9c2   : > { %v1939_v55 = vpack.c.bf16 %v1938_v53, %v1938_v53  ;;  %3947 = vrcp.f32 %v2051_v58  ;;  %v3461_v38 = vor.u32 %v3693_v35, %v3460_v34  ;;  %2429 = vmatpush.bf16.msrb.mxu1 %v3465_v41  ;;  %v3420_v58 = vld [vmem:[#allocation22 + $0xa0] sm:$0xf]  ;;  %v3374_v34 = vld [vmem:[#allocation22 + $0x50] sm:$0xf0]  ;;  %v3380_v35 = vld [vmem:[#allocation22 + $0x48] sm:$0xf] }
 0x9c3   : > { %v1998_v63 = vpack.c.bf16 %v1997_v57, %v1997_v57  ;;  %v3381_v39 = vor.u32 %v3673_v37, %v3380_v35  ;;  %v3382_v41 = vld [vmem:[#allocation22 + $0x58] sm:$0xf0]  ;;  %v3908_v35 = vld [vmem:[%s5100_s16] ss:$0 sm:$0xff] }
 0x9c4   : > { %3301 = vmatmul.msk.bf16.vlgmr.msra.gmra.mxu0 %vm1285_vm3, %v1939_v55  ;;  %v3687_v55 = vld [vmem:[#allocation22 + $0xcc] sm:$0xf] }
 0x9c5   : > { %v3449_v57 = vor.u32 %v3687_v55, %v3446_v56  ;;  %v3340_v55 = vld [vmem:[#allocation22] sm:$0xf] }
 0x9c7   : > { %2430 = vmatpush.bf16.msrb.mxu1 %v3449_v57  ;;  %v3664_v57 = vld [vmem:[#allocation22 + $0xc] sm:$0xf0] }
 0x9c8   : > { %v3948_v46 = vpop.eup %3947 }
 0x9c9   : > { %v2053_v0 = vmul.f32 %v3948_v46, %v3942_v44  ;;  %v3422_v46 = vld [vmem:[#allocation22 + $0xb0] sm:$0xf0] }
 0x9cb   : > { %v2000_v59 = vpop.permute.xlu0 %1999  ;;  %v2054_v3 = vpack.c.bf16 %v2053_v0, %v2053_v0  ;;  %v3428_v0 = vld [vmem:[#allocation22 + $0xa8] sm:$0xf] }
 0x9cc   : > { %v2005_v60 = vsel %vm1301_vm1, %v2000_v59, 0  ;;  %v3684_v59 = vld [vmem:[#allocation22 + $0xac] sm:$0xf0] }
 0x9cd   : > { %2014 = vmatpush.bf16.msrb.mxu2 %v2005_v60  ;;  %v3682_v60 = vld [vmem:[#allocation22 + $0xa4] sm:$0xf] }
 0x9d0   : > { %3303 = vmatmul.msk.bf16.vlgmr.msrb.gmra.mxu2 %vm1285_vm3, %v1998_v63  ;;  %v3421_v63 = vor.u32 %v3684_v59, %v3420_v58  ;;  %v3662_v58 = vld [vmem:[#allocation22 + $0x4] sm:$0xf]  ;;  %v3342_v59 = vld [vmem:[#allocation22 + $0x10] sm:$0xf0] }
 0x9d1   : > { %2390 = vmatpush.bf16.msra.mxu2 %v3453_v32  ;;  %v3670_v32 = vld [vmem:[#allocation22 + $0x44] sm:$0xf] }
 0x9d5   : > { %2391 = vmatpush.bf16.msra.mxu2 %v3437_v49  ;;  %v3364_v49 = vld [vmem:[#allocation22 + $0x28] sm:$0xf] }
 0x9d8   : > { %v2056_v1 = vpop.permute.xlu1 %2055 }
 0x9d9   : > { %v2061_v2 = vsel %vm1301_vm1, %v2056_v1, 0  ;;  %v3685_v1 = vld [vmem:[#allocation22 + $0xb4] sm:$0xf0]  ;;  %2392 = vmatpush.bf16.msra.mxu2 %v3421_v63  ;;  %v3345_v63 = vor.u32 %v3662_v58, %v3342_v59 }
 0x9da   : > { %2070 = vmatpush.bf16.msrb.mxu0 %v2061_v2  ;;  %v3425_v2 = vor.u32 %v3682_v60, %v3422_v46  ;;  %v3341_v60 = vor.u32 %v3664_v57, %v3340_v55  ;;  %v3348_v46 = vld [vmem:[#allocation22 + $0x8] sm:$0xf] }
 0x9dd   : > { %3305 = vmatmul.msk.bf16.vlgmr.msrb.gmra.mxu0 %vm1285_vm3, %v2054_v3  ;;  %v3429_v3 = vor.u32 %v3685_v1, %v3428_v0  ;;  %v3665_v0 = vld [vmem:[#allocation22 + $0x14] sm:$0xf0]  ;;  %v3663_v1 = vld [vmem:[#allocation22 + $0xc] sm:$0xf] }
 0x9de   : > { %2416 = vmatpush.bf16.msra.mxu0 %v3461_v38  ;;  %v3377_v38 = vor.u32 %v3670_v32, %v3374_v34  ;;  %v3712_v32 = vld [vmem:[#allocation23 + $0x90] sm:$0xff] }
 0x9e2   : > { %2417 = vmatpush.bf16.msra.mxu0 %v3445_v54  ;;  %v3366_v54 = vld [vmem:[#allocation22 + $0x38] sm:$0xf0] }
 0x9e6   : > { %2418 = vmatpush.bf16.msra.mxu0 %v3429_v3  ;;  %v3350_v3 = vld [vmem:[#allocation22 + $0x18] sm:$0xf0] }
 0x9ea   : > { %2419 = vmatpush.bf16.msra.mxu0 %v3413_v16  ;;  %v3708_v16 = vld [vmem:[#allocation23 + $0x70] sm:$0xff] }
 0xa41   : > { %v1960_v4 = vpop.f32.mrf.mxu0 }
 0xa42   : > { %2077 = vrot.lane.b32.xlu0 %v1960_v4, %s4493_s29  ;;  %v3683_v4 = vld [vmem:[#allocation22 + $0xac] sm:$0xf]  ;;  %s3065_s29 = sshll.u32 %s4846_s6, 2 }
 0xa43   : > { %s1019_s24 = scalar_lea.vmem [#allocation25], %s3065_s29 }
 0xa44   : > { %s2809_s7 = sshll.u32 %s1019_s24, 4  ;;  %s2810_s7 = int_to_ptr.vmem [resolvable:$true] %s2809_s7 }
 0xa49   : > { %v1962_v5 = vpop.f32.mrf.mxu0 }
 0xa4a   : > { %v3430_v5 = vld [vmem:[#allocation22 + $0xb8] sm:$0xf0] }
 0xa53   : > { %v2016_v7 = vpop.f32.mrf.mxu2 }
 0xa54   : > { %2081 = vrot.lane.b32.xlu2 %v2016_v7, %s4491_s4  ;;  %v3433_v7 = vor.u32 %v3683_v4, %v3430_v5  ;;  %v3353_v4 = vor.u32 %v3663_v1, %v3350_v3 }
 0xa56   : > { %2431 = vmatpush.bf16.msrb.mxu1 %v3433_v7  ;;  %v3717_v7 = vld [vmem:[#allocation23 + $0xb8] sm:$0xff] }
 0xa5a   : > { %v2072_v9 = vpop.f32.mrf.mxu0 }
 0xa5b   : > { %v2018_v10 = vpop.f32.mrf.mxu2  ;;  %2085 = vrot.lane.b32.xlu0 %v2072_v9, %s4492_s27  ;;  %v3404_v9 = vld [vmem:[#allocation22 + $0x80] sm:$0xf]  ;;  %s5191_s27 = sld [smem:[#allocation57_spill]] }
 0xa5c   : > { %v3680_v10 = vld [vmem:[#allocation22 + $0x8c] sm:$0xf0] }
 0xa5d   : > { %v3405_v12 = vor.u32 %v3680_v10, %v3404_v9  ;;  %v3725_v9 = vld [vmem:[#allocation23 + $0xf8] sm:$0xff] }
 0xa5f   : > { %2393 = vmatpush.bf16.msra.mxu2 %v3405_v12  ;;  %v3709_v12 = vld [vmem:[#allocation23 + $0x78] sm:$0xff] }
 0xa62   : > { %v2074_v11 = vpop.f32.mrf.mxu0 }
 0xa63   : > { %v3678_v11 = vld [vmem:[#allocation22 + $0x84] sm:$0xf] }
 0xa64   : > { %v3409_v15 = vor.u32 %v3678_v11, %v3406_v13  ;;  %v3701_v11 = vld [vmem:[#allocation23 + $0x38] sm:$0xff]  ;;  %v3716_v13 = vld [vmem:[#allocation23 + $0xb0] sm:$0xff] }
 0xaae   : > { %v2082_v20 = vpop.permute.xlu2 %2081 }
 0xab4   : > { %v2078_v18 = vpop.permute.xlu0 %2077 }
 0xab5   : > { %v2088_v19 = vsel %vm1265_vm0, %v1895_v50, %v2078_v18  ;;  %v3438_v50 = vld [vmem:[#allocation22 + $0xd0] sm:$0xf0]  ;;  %v3417_v18 = vor.u32 %v3679_v17, %v3414_v8  ;;  %v3715_v17 = vld [vmem:[#allocation23 + $0xa8] sm:$0xff] }
 0xab6   : > { %v2089_v21 = vsel %vm1508_vm4, %v2088_v19, %v2082_v20  ;;  %v3441_v53 = vor.u32 %v3686_v48, %v3438_v50  ;;  %v3388_v19 = vld [vmem:[#allocation22 + $0x60] sm:$0xf]  ;;  %v3676_v20 = vld [vmem:[#allocation22 + $0x6c] sm:$0xf0]  ;;  %v3358_v48 = vld [vmem:[#allocation22 + $0x30] sm:$0xf0] }
 0xab7   : > { %2432 = vmatpush.bf16.msrb.mxu1 %v3417_v18  ;;  %v3669_v50 = vld [vmem:[#allocation22 + $0x34] sm:$0xf0]  ;;  %v3361_v51 = vor.u32 %v3666_v45, %v3358_v48  ;;  %v3723_v8 = vld [vmem:[#allocation23 + $0xe8] sm:$0xff]  ;;  %v3696_v45 = vld [vmem:[#allocation23 + $0x10] sm:$0xff] }
 0xab8   : > { %2404 = vmatpush.bf16.msrb.mxu3 %v3441_v53  ;;  %v3365_v52 = vor.u32 %v3669_v50, %v3364_v49  ;;  %v3667_v53 = vld [vmem:[#allocation22 + $0x2c] sm:$0xf]  ;;  %v3718_v48 = vld [vmem:[#allocation23 + $0xc0] sm:$0xff] }
 0xab9   : > { %v3369_v56 = vor.u32 %v3667_v53, %v3366_v54  ;;  %v3699_v18 = vld [vmem:[#allocation23 + $0x28] sm:$0xff]  ;;  %v2220_v53 = vld [vmem:[%s5190_s23] sm:$0xf]  ;;  %s2811_s23 = sshll.u32 %s2807_s14, 4  ;;  %s2812_s23 = int_to_ptr.hbm [resolvable:$true] %s2811_s23 }
 0xaba   : > { %v3695_v49 = vld [vmem:[#allocation23 + $0x8] sm:$0xff]  ;;  %v2224_v54 = vperm.slane %v2220_v53, 2  ;;  %v2225_v55 = vperm.slane %v2220_v53, 3  ;;  %s4387_s4 = sshra.s32 %s2812_s23, 4  ;;  %s4388_s4 = int_to_ptr.hbm [resolvable:$true] %s4387_s4 }
 0xabb   : > { %v3703_v50 = vld [vmem:[#allocation23 + $0x48] sm:$0xff]  ;;  %p4394_p12 = scmp.lt.s32.totalorder %s4388_s4, %s5194_s3 }
 0xabc   : > { %2405 = vmatpush.bf16.msrb.mxu3 %v3425_v2  ;;  %v3349_v2 = vor.u32 %v3665_v0, %v3348_v46 }
 0xac0   : > { %2406 = vmatpush.bf16.msrb.mxu3 %v3409_v15  ;;  %v3700_v15 = vld [vmem:[#allocation23 + $0x30] sm:$0xff] }
 0xacd   : > { %v2086_v22 = vpop.permute.xlu0 %2085 }
 0xace   : > { %v2090_v62 = vsel %vm1510_vm5, %v2089_v21, %v2086_v22  ;;  %v3674_v21 = vld [vmem:[#allocation22 + $0x64] sm:$0xf]  ;;  %v3389_v22 = vor.u32 %v3676_v20, %v3388_v19  ;;  %v3707_v19 = vld [vmem:[#allocation23 + $0x68] sm:$0xff] }
 0xacf   : > { %v2091_v23 = vpack.c.bf16 %v2090_v62, %v2090_v62  ;;  %v3390_v62 = vld [vmem:[#allocation22 + $0x70] sm:$0xf0]  ;;  %v3714_v20 = vld [vmem:[#allocation23 + $0xa0] sm:$0xff] }
 0xad0   : > { %2394 = vmatpush.bf16.msra.mxu2 %v3389_v22 }
 0xad1   : > { %2151 = vmatmul.bf16.vlgmr.msra.gmra.mxu1 %v2091_v23  ;;  %v3396_v23 = vld [vmem:[#allocation22 + $0x68] sm:$0xf] }
 0xad4   : > { %2395 = vmatpush.bf16.msra.mxu2 %v3373_v33  ;;  %v3720_v33 = vld [vmem:[#allocation23 + $0xd0] sm:$0xff] }
 0xb4e   : > { %v2152_v25 = vpop.f32.mrf.mxu1 }
 0xb4f   : > { %v2153_v26 = vadd.f32 %v3907_v24, %v2152_v25  ;;  %v3677_v24 = vld [vmem:[#allocation22 + $0x74] sm:$0xf0]  ;;  %v3393_v25 = vor.u32 %v3674_v21, %v3390_v62  ;;  %v3722_v21 = vld [vmem:[#allocation23 + $0xe0] sm:$0xff] }
 0xb50   : > { %v3698_v62 = vld [vmem:[#allocation23 + $0x20] sm:$0xff] }
 0xb51   : > { %v2156_v27 = vadd.f32 %v2153_v26, %v4958_v6  ;;  %v3397_v26 = vor.u32 %v3677_v24, %v3396_v23  ;;  %2407 = vmatpush.bf16.msrb.mxu3 %v3393_v25  ;;  %v3706_v23 = vld [vmem:[#allocation23 + $0x60] sm:$0xff] }
 0xb53   : > { %2159 = vadd.xlane.f32.xlu0 %v2156_v27  ;;  %2420 = vmatpush.bf16.msra.mxu0 %v3397_v26  ;;  %v3713_v26 = vld [vmem:[#allocation23 + $0x98] sm:$0xff] }
 0xb55   : > { %2408 = vmatpush.bf16.msrb.mxu3 %v3377_v38 }
 0xb56   : > { %v2154_v28 = vpop.f32.mrf.mxu1 }
 0xb57   : > { %v3398_v28 = vld [vmem:[#allocation22 + $0x78] sm:$0xf0]  ;;  %2421 = vmatpush.bf16.msra.mxu0 %v3381_v39  ;;  %v3909_v39 = vld [vmem:[%s5189_s5] ss:$0 sm:$0xff] }
 0xb59   : > { %2409 = vmatpush.bf16.msrb.mxu3 %v3361_v51  ;;  %v3694_v51 = vld [vmem:[#allocation23] sm:$0xff] }
 0xb5b   : > { %2422 = vmatpush.bf16.msra.mxu0 %v3365_v52  ;;  %v3702_v52 = vld [vmem:[#allocation23 + $0x40] sm:$0xff] }
 0xb5d   : > { %2410 = vmatpush.bf16.msrb.mxu3 %v3345_v63  ;;  %v2223_v63 = vperm.slane %v2220_v53, 1 }
 0xb5f   : > { %2423 = vmatpush.bf16.msra.mxu0 %v3349_v2 }
 0xb61   : > { %2723 = vmatpush.bf16.msra.mxu3 %v3709_v12 }
 0xb63   : > { %2736 = vmatpush.bf16.msrb.mxu0 %v3717_v7 }
 0xb65   : > { %2724 = vmatpush.bf16.msra.mxu3 %v3708_v16 }
 0xb67   : > { %2737 = vmatpush.bf16.msrb.mxu0 %v3716_v13 }
 0xb69   : > { %2725 = vmatpush.bf16.msra.mxu3 %v3707_v19  ;;  %v3910_v19 = vld [vmem:[%s5191_s27] ss:$0 sm:$0xff]  ;;  %s4389_s27 = scalar_lea.hbm %s4388_s4, 4 }
 0xb6a   : > { %p4390_p3 = scmp.ne.s32.totalorder %s4388_s4, %s4389_s27  ;;  %p4395_p2 = scmp.lt.s32.totalorder %s4393_s2, %s4389_s27 }
 0xb6b   : > { %2738 = vmatpush.bf16.msrb.mxu0 %v3715_v17 }
 0xb6c   : > { %p4391_p8 = pnand %p4390_p3, %p4717_p0  ;;  %p4396_p4 = por %p4395_p2, %p4394_p12 }
 0xb6d   : > { %2726 = vmatpush.bf16.msra.mxu3 %v3706_v23 }
 0xb6e   : > { %p4392_p9 = pneg %p4391_p8 }
 0xb6f   : > { %2739 = vmatpush.bf16.msrb.mxu0 %v3714_v20 }
 0xb70   : > { %p4397_p13 = pnand %p4396_p4, %p4392_p9 }
 0xb73   : > { %2740 = vmatpush.bf16.msrb.mxu0 %v3713_v26 }
 0xb77   : > { %2741 = vmatpush.bf16.msrb.mxu0 %v3712_v32 }
 0xbc6   : > { %v2160_v42 = vpop.xlane.xlu0 %2159 }
 0xbc7   : > { %v2161_v6 = vmul.f32 %v2160_v42, %v4950_v36  ;;  %v3385_v42 = vor.u32 %v3671_v40, %v3382_v41 }
 0xbc9   : > { %v5019_v43 = vsub.f32 %v2156_v27, %v2161_v6  ;;  %v3675_v27 = vld [vmem:[#allocation22 + $0x6c] sm:$0xf]  ;;  %v3356_v6 = vld [vmem:[#allocation22 + $0x20] sm:$0xf] }
 0xbca   : > { %v3401_v29 = vor.u32 %v3675_v27, %v3398_v28  ;;  %v3721_v27 = vld [vmem:[#allocation23 + $0xd8] sm:$0xff] }
 0xbcb   : > { %v2163_v44 = vmul.f32 %v5019_v43, %v5019_v43  ;;  %v3697_v28 = vld [vmem:[#allocation23 + $0x18] sm:$0xff] }
 0xbcc   : > { %2433 = vmatpush.bf16.msrb.mxu1 %v3401_v29  ;;  %v3705_v29 = vld [vmem:[#allocation23 + $0x58] sm:$0xff] }
 0xbcd   : > { %2164 = vadd.xlane.f32.xlu1 %v2163_v44  ;;  %v3668_v44 = vld [vmem:[#allocation22 + $0x2c] sm:$0xf0]  ;;  %2727 = vmatpush.bf16.msra.mxu3 %v3705_v29 }
 0xbce   : > { %v3357_v47 = vor.u32 %v3668_v44, %v3356_v6  ;;  %v3711_v6 = vld [vmem:[#allocation23 + $0x88] sm:$0xff] }
 0xbcf   : > { %v3719_v44 = vld [vmem:[#allocation23 + $0xc8] sm:$0xff]  ;;  %2742 = vmatpush.bf16.msrb.mxu0 %v3711_v6  ;;  %v3911_v6 = vld [vmem:[%s5192_s25] ss:$0 sm:$0xff] }
 0xbd0   : > { %2434 = vmatpush.bf16.msrb.mxu1 %v3385_v42  ;;  %2396 = vmatpush.bf16.msra.mxu2 %v3357_v47  ;;  %v3710_v47 = vld [vmem:[#allocation23 + $0x80] sm:$0xff] }
 0xbd3   : > { %2743 = vmatpush.bf16.msrb.mxu0 %v3710_v47 }
 0xbd4   : > { %2435 = vmatpush.bf16.msrb.mxu1 %v3369_v56  ;;  %2397 = vmatpush.bf16.msra.mxu2 %v3341_v60  ;;  %v2222_v60 = vperm.slane %v2220_v53, 0 }
 0xbd8   : > { %2436 = vmatpush.bf16.msrb.mxu1 %v3353_v4  ;;  %2710 = vmatpush.bf16.msrb.mxu2 %v3701_v11 }
 0xbdc   : > { %2749 = vmatpush.bf16.msra.mxu1 %v3725_v9  ;;  %2711 = vmatpush.bf16.msrb.mxu2 %v3700_v15 }
 0xbe0   : > { %2750 = vmatpush.bf16.msra.mxu1 %v3724_v14  ;;  %2712 = vmatpush.bf16.msrb.mxu2 %v3699_v18 }
 0xbe4   : > { %2751 = vmatpush.bf16.msra.mxu1 %v3723_v8  ;;  %2713 = vmatpush.bf16.msrb.mxu2 %v3698_v62 }
 0xbe8   : > { %2752 = vmatpush.bf16.msra.mxu1 %v3722_v21  ;;  %2714 = vmatpush.bf16.msrb.mxu2 %v3697_v28 }
 0xbec   : > { %2753 = vmatpush.bf16.msra.mxu1 %v3721_v27  ;;  %2715 = vmatpush.bf16.msrb.mxu2 %v3696_v45  ;;  %v3912_v45 = vld [vmem:[%s5193_s19] ss:$0 sm:$0xff] }
 0xbf0   : > { %2754 = vmatpush.bf16.msra.mxu1 %v3720_v33  ;;  %2716 = vmatpush.bf16.msrb.mxu2 %v3695_v49 }
 0xbf4   : > { %2755 = vmatpush.bf16.msra.mxu1 %v3719_v44  ;;  %2717 = vmatpush.bf16.msrb.mxu2 %v3694_v51 }
 0xbf8   : > { %2756 = vmatpush.bf16.msra.mxu1 %v3718_v48 }
 0xc40   : > { %v2165_v5 = vpop.xlane.xlu1 %2164 }
 0xc41   : > { %v2166_v10 = vmul.f32 %v2165_v5, %v4950_v36 }
 0xc43   : > { %v2167_v61 = vadd.f32 1e-05, %v2166_v10 }
 0xc45   : > { %3949 = vrsqrt.f32 %v2167_v61  ;;  %vm2174_vm12 = vweird.f32 %v2167_v61 }
 0xc4b   : > { %v3950_v22 = vpop.eup %3949 }
 0xc4c   : > { %v2169_v24 = vmul.f32 %v3950_v22, %v2167_v61  ;;  %vm2175_vm11 = vweird.f32 %v3950_v22 }
 0xc4d   : > { %vm2176_vm13 = vmor %vm2174_vm12, %vm2175_vm11 }
 0xc4e   : > { %v2170_v25 = vmul.f32 %v3950_v22, %v2169_v24 }
 0xc50   : > { %v2171_v30 = vmul.f32 0.5, %v2170_v25 }
 0xc52   : > { %v2172_v31 = vsub.f32 1.5, %v2171_v30 }
 0xc54   : > { %v2173_v34 = vmul.f32 %v3950_v22, %v2172_v31 }
 0xc56   : > { %v2177_v37 = vsel %vm2176_vm13, %v3950_v22, %v2173_v34 }
 0xc57   : > { %v2178_v38 = vmul.f32 %v2177_v37, %v5019_v43  ;;  %v3704_v43 = vld [vmem:[#allocation23 + $0x50] sm:$0xff] }
 0xc58   : > { %2728 = vmatpush.bf16.msra.mxu3 %v3704_v43 }
 0xc59   : > { %v2182_v40 = vmul.f32 %v3908_v35, %v2178_v38 }
 0xc5b   : > { %v5031_v41 = vadd.f32 %v3909_v39, %v2182_v40 }
 0xc5c   : > { %2729 = vmatpush.bf16.msra.mxu3 %v3703_v50 }
 0xc5d   : > { %v2187_v42 = vpack.c.bf16 %v5031_v41, %v5031_v41 }
 0xc5f   : > { %2398 = vmatmul.bf16.vlgmr.msra.gmra.mxu2 %v2187_v42  ;;  %2411 = vmatmul.bf16.vlgmr.msrb.gmra.mxu3 %v2187_v42 }
 0xc60   : > { %2424 = vmatmul.bf16.vlgmr.msra.gmra.mxu0 %v2187_v42  ;;  %2437 = vmatmul.bf16.vlgmr.msrb.gmra.mxu1 %v2187_v42 }
 0xc61   : > { %2730 = vmatpush.bf16.msra.mxu3 %v3702_v52 }
 0xcdd   : > { %v2425_v56 = vpop.f32.mrf.mxu0  ;;  %v2438_v57 = vpop.f32.mrf.mxu1 }
 0xcde   : > { %v2426_v58 = vadd.f32 %v2425_v56, %v2224_v54  ;;  %v2439_v59 = vadd.f32 %v2438_v57, %v2225_v55 }
 0xce0   : > { %v2444_v46 = vmax.f32 %v2426_v58, 0.0  ;;  %v2445_v0 = vmax.f32 %v2439_v59, 0.0 }
 0xce2   : > { %v2448_v1 = vpack.c.bf16 %v2444_v46, %v2444_v46  ;;  %v2449_v2 = vpack.c.bf16 %v2445_v0, %v2445_v0  ;;  %v2399_v3 = vpop.f32.mrf.mxu2  ;;  %v2412_v4 = vpop.f32.mrf.mxu3 }
 0xce3   : > { %v2400_v5 = vadd.f32 %v2399_v3, %v2222_v60  ;;  %v2413_v7 = vadd.f32 %v2412_v4, %v2223_v63 }
 0xce4   : > { %2744 = vmatmul.bf16.vlgmr.msrb.gmra.mxu0 %v2448_v1  ;;  %2757 = vmatmul.bf16.vlgmr.msra.gmra.mxu1 %v2449_v2 }
 0xce5   : > { %v2442_v9 = vmax.f32 %v2400_v5, 0.0  ;;  %v2443_v10 = vmax.f32 %v2413_v7, 0.0  ;;  %v2427_v11 = vpop.f32.mrf.mxu0  ;;  %v2440_v12 = vpop.f32.mrf.mxu1 }
 0xce7   : > { %v2446_v13 = vpack.c.bf16 %v2442_v9, %v2442_v9  ;;  %v2447_v14 = vpack.c.bf16 %v2443_v10, %v2443_v10 }
 0xce9   : > { %2718 = vmatmul.bf16.vlgmr.msrb.gmra.mxu2 %v2446_v13  ;;  %2731 = vmatmul.bf16.vlgmr.msra.gmra.mxu3 %v2447_v14 }
 0xcea   : > { %v2401_v61 = vpop.f32.mrf.mxu2  ;;  %v2414_v15 = vpop.f32.mrf.mxu3 }
 0xd61   : > { %v2745_v16 = vpop.f32.mrf.mxu0  ;;  %v2758_v17 = vpop.f32.mrf.mxu1 }
 0xd69   : > { %v2747_v8 = vpop.f32.mrf.mxu0  ;;  %v2760_v18 = vpop.f32.mrf.mxu1 }
 0xd6c   : > { %v2719_v20 = vpop.f32.mrf.mxu2  ;;  %v2732_v21 = vpop.f32.mrf.mxu3 }
 0xd6d   : > { %v2720_v22 = vadd.f32 %v3910_v19, %v2719_v20 }
 0xd6f   : > { %v2733_v62 = vadd.f32 %v2732_v21, %v2720_v22 }
 0xd71   : > { %v2746_v23 = vadd.f32 %v2745_v16, %v2733_v62 }
 0xd73   : > { %v2759_v24 = vadd.f32 %v2758_v17, %v2746_v23 }
 0xd74   : > { %v2721_v25 = vpop.f32.mrf.mxu2  ;;  %v2734_v26 = vpop.f32.mrf.mxu3 }
 0xd75   : > { %v2762_v27 = vmax.f32 %v2759_v24, 0.0 }
 0xd77   : > { %v2763_v28 = vadd.f32 %v2762_v27, %v5031_v41 }
 0xd79   : > { %2766 = vadd.xlane.f32.xlu2 %v2763_v28 }
 0xdec   : > { %v2767_v29 = vpop.xlane.xlu2 %2766 }
 0xded   : > { %v2768_v30 = vmul.f32 %v2767_v29, %v4950_v36 }
 0xdef   : > { %v2769_v31 = vsub.f32 %v2763_v28, %v2768_v30 }
 0xdf1   : > { %v2770_v32 = vmul.f32 %v2769_v31, %v2769_v31 }
 0xdf3   : > { %2771 = vadd.xlane.f32.xlu0 %v2770_v32 }
 0xe66   : > { %v2772_v33 = vpop.xlane.xlu0 %2771 }
 0xe67   : > { %v2773_v34 = vmul.f32 %v2772_v33, %v4950_v36 }
 0xe69   : > { %v2774_v35 = vadd.f32 1e-05, %v2773_v34 }
 0xe6b   : > { %3951 = vrsqrt.f32 %v2774_v35  ;;  %vm2781_vm15 = vweird.f32 %v2774_v35 }
 0xe71   : > { %v3952_v37 = vpop.eup %3951 }
 0xe72   : > { %v2776_v38 = vmul.f32 %v3952_v37, %v2774_v35  ;;  %vm2782_vm14 = vweird.f32 %v3952_v37 }
 0xe73   : > { %vm2783_vm0 = vmor %vm2781_vm15, %vm2782_vm14 }
 0xe74   : > { %v2777_v39 = vmul.f32 %v3952_v37, %v2776_v38 }
 0xe76   : > { %v2778_v40 = vmul.f32 0.5, %v2777_v39 }
 0xe78   : > { %v2779_v42 = vsub.f32 1.5, %v2778_v40 }
 0xe7a   : > { %v2780_v41 = vmul.f32 %v3952_v37, %v2779_v42 }
 0xe7c   : > { %v2784_v44 = vsel %vm2783_vm0, %v3952_v37, %v2780_v41 }
 0xe7d   : > { %v2785_v36 = vmul.f32 %v2784_v44, %v2769_v31 }
 0xe7f   : > { %v2789_v43 = vmul.f32 %v3911_v6, %v2785_v36 }
 0xe81   : > { %v2793_v47 = vadd.f32 %v3912_v45, %v2789_v43 }
 0xe83   : > { %v2794_v48 = vpack.c.bf16 %v2793_v47, %v2793_v47 }
 0xe85   : > { %2795 = vst [vmem:[%s1019_s24] sm:$0xf] %v2794_v48 }
 0xe86   : > { %4400 = shalt.err (!%p4397_p13)
}
 0xe87   : > { %3774 = dma.vmem_to_hbm [thread:$0]  (%p4717_p0), %s2810_s7, 64, %s2812_s23, %s2797_s1  }
 0xe88 PF: > { %s5196_s6 = sld [smem:[#allocation36_spill]]  ;;  %p5198_p1 = scmp.ge.s32.totalorder %s4471_s28, 2 }
 0xe8a   : > { %p3821_p7 = pnand %p5198_p1, %p4725_p5 }
 0xe8c   : > { %p3822_p6 = pneg %p3821_p7 }
 0xe8e   : > { %s2823_s21 = sand.u32 1, %s5196_s6  }
 0xe8f   : > { %s2824_s19 = scalar_lea.sflag [#allocation4], %s2823_s21 }
 0xe90   : > { %4454 = dma.done.wait (%p3822_p6), %s2824_s19, 64  }
 0xe91   : > { %4456 = vsyncadd (%p3822_p6), %s2824_s19, 4294967232  ;;  %s5199_s28 = sld [smem:[#allocation38_spill]]  ;;  %s5202_s5 = smov %s4463_s26 }
 0xe92   : > { %s5200_s30 = sld [smem:[#allocation37_spill]] }
 0xe93   : > { %s5201_s27 = sld [smem:[#allocation39_spill]] }
 0xe97   : > { %p48_p10 = scmp.ge.s32.totalorder %s5199_s28, 4  }
 0xe98   : > { %s5203_s26 = smov %s5200_s30 }
 0xe99   :  { %50 = sbr.rel (!%p48_p10) target bundleno = 34 (0x22), region = 238 }
 0xe9e   :  { %2830 = vsyncpa [#allocation3], 1 }
 0xe9f   :  { %2832 = vsyncpa [#allocation3 + $0x1], 1 }
 0xea0   :  { %2833 = vsyncpa [#allocation6], 1 }
 0xea1   :  { %2835 = vsyncpa [#allocation6 + $0x1], 1 }
 0xea2   :  { %2836 = vsyncpa [#allocation9], 1 }
 0xea3   :  { %2838 = vsyncpa [#allocation9 + $0x1], 1 }
 0xea4   :  { %2839 = vsyncpa [#allocation12], 1 }
 0xea5   :  { %2840 = vsyncpa [#allocation15], 1 }
 0xea6   :  { %2841 = vsyncpa [#allocation18], 1 }
 0xea7   :  { %2842 = vsyncpa [#allocation21], 1 }
 0xea8   :  { %2843 = vsyncpa [#allocation24], 1 }
 0xea9   :  { %2844 = vsyncpa [#allocation4], 1 }
 0xeaa   :  { %2846 = vsyncpa [#allocation4 + $0x1], 1 }

</bundles_post_ra>
